<compile_context>
chip_gen: v5e
topology: v5e:2x2
jax: 0.10.0
libtpu: 0.0.40
codegen_flags: <defaults>
</compile_context>

<pallas_src>
import jax
import jax.numpy as jnp
from jax.experimental import pallas as pl
from jax.experimental.pallas import tpu as pltpu

EPS = 1e-5


def _conv_pool_stats_kernel(xt_ref, w_ref, pmax_ref, pmin_ref, s_ref, ss_ref):
    # xt_ref:   (1, 1, TH+2, W+2, Cin)       padded input row-tile (halo included)
    # w_ref:    (9, Cin, Cout)               conv taps, index = ky*3 + kx
    # pmax_ref: (1, 1, TH//2, (W//2)*Cout)   2x2-pooled max of raw conv tile
    # pmin_ref: (1, 1, TH//2, (W//2)*Cout)   2x2-pooled min of raw conv tile
    # s_ref:    (1, 1, 1, Cout)              per-tile per-channel sum        (f32)
    # ss_ref:   (1, 1, 1, Cout)              per-tile per-channel sum-of-sq  (f32)
    _, _, THp2, Wp2, Cin = xt_ref.shape
    TH, W = THp2 - 2, Wp2 - 2
    Cout = w_ref.shape[-1]

    xt = xt_ref[...].reshape(THp2, Wp2, Cin)   # compute dtype (bf16/f32)
    w = w_ref[...]                             # (9, Cin, Cout)

    # Tap-wise im2col: 9 accumulated MXU matmuls (K = Cin) over shifted slices of the
    # padded tile.  No 9x concat is materialized; accumulation stays in f32.
    acc = jnp.zeros((TH * W, Cout), jnp.float32)
    for ky in range(3):
        for kx in range(3):
            lhs = xt[ky:ky + TH, kx:kx + W, :].reshape(TH * W, Cin)
            acc = acc + jnp.dot(lhs, w[ky * 3 + kx],
                                preferred_element_type=jnp.float32)

    # BN batch statistics (training mode) accumulated in the conv epilogue; the tiny
    # cross-tile reduction happens in XLA glue.  (E[x^2]-E[x]^2 in f32 is fine at the
    # validated 1e-3 tolerance for this forward pass.)
    s_ref[...] = jnp.sum(acc, axis=0).reshape(1, 1, 1, Cout)
    ss_ref[...] = jnp.sum(acc * acc, axis=0).reshape(1, 1, 1, Cout)

    # Fused 2x2/2 pooling of the *raw* (pre-BN) conv tile: pooled max AND pooled min.
    # BN affine + ReLU are applied to these in the wrapper, selecting max/min per the
    # sign of the per-channel BN scale (exact).
    a = acc.reshape(TH // 2, 2, W // 2, 2, Cout)
    row_max = jnp.maximum(a[:, 0], a[:, 1])                  # (TH//2, W//2, 2, Cout)
    row_min = jnp.minimum(a[:, 0], a[:, 1])
    pmax = jnp.maximum(row_max[:, :, 0], row_max[:, :, 1])   # (TH//2, W//2, Cout)
    pmin = jnp.minimum(row_min[:, :, 0], row_min[:, :, 1])

    pmax_ref[...] = pmax.reshape(1, 1, TH // 2, (W // 2) * Cout).astype(pmax_ref.dtype)
    pmin_ref[...] = pmin.reshape(1, 1, TH // 2, (W // 2) * Cout).astype(pmin_ref.dtype)


def _pick_row_tile_and_vmem(H, W, Cin, Cout, itemsize, row_tile):
    """Largest even row-tile divisor of H whose double-buffered working set fits."""
    def need_bytes(th):
        in_b = (th + 2) * (W + 2) * Cin * itemsize
        out_b = 2 * (th // 2) * (W // 2) * Cout * itemsize + 2 * Cout * 4
        w_b = 9 * Cin * Cout * itemsize
        acc_b = th * W * Cout * 4 + th * W * Cin * itemsize   # f32 acc + one tap slice
        return 2 * (in_b + out_b) + 2 * w_b + acc_b           # 2x: pipeline double-buffers

    if row_tile is None:
        budget = 40 << 20            # headroom inside v7x's 64 MiB physical VMEM
        row_tile = 2
        for th in range(H, 1, -2):
            if H % th == 0 and need_bytes(th) <= budget:
                row_tile = th
                break
    assert H % row_tile == 0 and row_tile % 2 == 0, "row tile must be an even divisor of H"
    # vmem limit derived from the chosen tile; clamp to [32, 48] MiB (48 < v7x physical 64)
    vmem_limit = int(min(max(2 * need_bytes(row_tile), 32 << 20), 48 << 20))
    return row_tile, vmem_limit


def downsample_conv_block(x_nchw, w_oihw, bias, gamma, beta, *,
                          compute_dtype=jnp.bfloat16, row_tile=None):
    """x_nchw: (N, Cin, H, W) -> (N, Cout, H//2, W//2); PyTorch layout conventions.

    Conv2d(3x3, pad=1) -> BatchNorm2d (training-mode batch stats) -> ReLU ->
    MaxPool2d(2x2).  `bias` is accepted for API parity but unused: training-mode BN
    mean subtraction cancels a per-channel conv bias exactly.
    """
    del bias  # absorbed by training-mode BN mean subtraction

    N, Cin, H, W = x_nchw.shape
    Cout = w_oihw.shape[0]
    assert H % 2 == 0 and W % 2 == 0, "MaxPool2d(2) needs even spatial dims"
    Hh, Wh = H // 2, W // 2
    out_dtype = x_nchw.dtype
    itemsize = jnp.dtype(compute_dtype).itemsize

    TH, vmem_limit = _pick_row_tile_and_vmem(H, W, Cin, Cout, itemsize, row_tile)
    nH = H // TH

    # Input prep (one fused XLA pass over x): NCHW -> NHWC, cast, pad=1, and extract
    # the nH overlapping (TH+2)-row windows that carry the conv halo -- so the kernel
    # needs no padded scratch and no per-step halo zero-fill.
    # TODO(synk): for tiny-Cin first layers an NCHW/W-on-lanes layout with pltpu.roll
    # tap shifts would avoid this transpose pass entirely (different matmul layout).
    x_nhwc = jnp.transpose(x_nchw, (0, 2, 3, 1)).astype(compute_dtype)
    x_pad = jnp.pad(x_nhwc, ((0, 0), (1, 1), (1, 1), (0, 0)))
    x_tiles = jnp.stack([x_pad[:, t * TH:t * TH + TH + 2] for t in range(nH)],
                        axis=1)                               # (N, nH, TH+2, W+2, Cin)

    # (Cout, Cin, 3, 3) -> (9, Cin, Cout); tap index = ky*3 + kx
    w_taps = jnp.transpose(w_oihw, (2, 3, 1, 0)).reshape(9, Cin, Cout).astype(compute_dtype)

    pooled_block = (1, 1, TH // 2, Wh * Cout)
    cparams = pltpu.CompilerParams(
        dimension_semantics=("parallel", "parallel"),   # batch x row-tiles -> both v7x TCs
        vmem_limit_bytes=vmem_limit,
    )

    pmax, pmin, s, ss = pl.pallas_call(
        _conv_pool_stats_kernel,
        grid=(N, nH),
        in_specs=[
            pl.BlockSpec((1, 1, TH + 2, W + 2, Cin), lambda n, t: (n, t, 0, 0, 0)),
            pl.BlockSpec((9, Cin, Cout), lambda n, t: (0, 0, 0)),
        ],
        out_specs=(
            pl.BlockSpec(pooled_block, lambda n, t: (n, t, 0, 0)),
            pl.BlockSpec(pooled_block, lambda n, t: (n, t, 0, 0)),
            pl.BlockSpec((1, 1, 1, Cout), lambda n, t: (n, t, 0, 0)),
            pl.BlockSpec((1, 1, 1, Cout), lambda n, t: (n, t, 0, 0)),
        ),
        out_shape=(
            jax.ShapeDtypeStruct((N, nH, TH // 2, Wh * Cout), compute_dtype),
            jax.ShapeDtypeStruct((N, nH, TH // 2, Wh * Cout), compute_dtype),
            jax.ShapeDtypeStruct((N, nH, 1, Cout), jnp.float32),
            jax.ShapeDtypeStruct((N, nH, 1, Cout), jnp.float32),
        ),
        compiler_params=cparams,
    )(x_tiles, w_taps)

    # Tiny XLA glue: reduce BN partial stats (biased/training variance), fold BN into
    # one scale/shift pair, then relu(select(scale>=0, scale*pmax, scale*pmin) + shift)
    # fused with the NCHW transpose.  Exact: BN is a per-channel affine, ReLU monotone.
    cnt = jnp.float32(N * H * W)
    mean = jnp.sum(s, axis=(0, 1, 2)) / cnt                      # (Cout,)
    var = jnp.sum(ss, axis=(0, 1, 2)) / cnt - mean * mean        # biased (training) var
    scale = gamma.astype(jnp.float32) * jax.lax.rsqrt(var + EPS)
    shift = beta.astype(jnp.float32) - mean * scale

    pmax = pmax.astype(jnp.float32).reshape(N, Hh, Wh, Cout)
    pmin = pmin.astype(jnp.float32).reshape(N, Hh, Wh, Cout)
    z = jnp.where(scale >= 0, scale * pmax, scale * pmin) + shift
    out_nhwc = jnp.maximum(z, 0.0).astype(out_dtype)
    return jnp.transpose(out_nhwc, (0, 3, 1, 2))


def _reference(x_nchw, w_oihw, bias, gamma, beta):
    y = jax.lax.conv_general_dilated(
        x_nchw, w_oihw, window_strides=(1, 1), padding=((1, 1), (1, 1)),
        dimension_numbers=("NCHW", "OIHW", "NCHW"),
        precision=jax.lax.Precision.HIGHEST)
    y = y + bias[None, :, None, None]
    mean = jnp.mean(y, axis=(0, 2, 3), keepdims=True)
    var = jnp.mean((y - mean) ** 2, axis=(0, 2, 3), keepdims=True)
    z = (y - mean) * jax.lax.rsqrt(var + EPS)
    z = z * gamma[None, :, None, None] + beta[None, :, None, None]
    z = jnp.maximum(z, 0.0)
    N, C, H, W = z.shape
    z = z.reshape(N, C, H // 2, 2, W // 2, 2)
    return z.max(axis=(3, 5))


if __name__ == "__main__":
    N, Cin, Cout, H, W = 2, 4, 8, 16, 16
    key = jax.random.PRNGKey(0)
    k1, k2, k3, k4, k5 = jax.random.split(key, 5)

    x = jax.random.normal(k1, (N, Cin, H, W), jnp.float32)
    w = 0.1 * jax.random.normal(k2, (Cout, Cin, 3, 3), jnp.float32)
    b = 0.1 * jax.random.normal(k3, (Cout,), jnp.float32)
    gamma = 1.0 + 0.1 * jax.random.normal(k4, (Cout,), jnp.float32)
    beta = 0.1 * jax.random.normal(k5, (Cout,), jnp.float32)

    ref = _reference(x, w, b, gamma, beta)

    # Exact f32-operand path; forces TH=8 so the multi-row-tile grid (N, 2) is exercised.
    out_f32 = downsample_conv_block(x, w, b, gamma, beta,
                                    compute_dtype=jnp.float32, row_tile=8)
    out_f32 = jax.block_until_ready(out_f32)
    assert out_f32.shape == (N, Cout, H // 2, W // 2), out_f32.shape
    err32 = jnp.max(jnp.abs(out_f32 - ref))
    assert jnp.allclose(out_f32, ref, atol=1e-3, rtol=1e-3), f"f32 max abs err = {err32}"

    # Default bf16-operand path (auto row tile; f32 MXU accumulation + f32 BN stats).
    # Looser tolerance only reflects bf16 operand/pooled-intermediate rounding.
    out_bf16 = downsample_conv_block(x, w, b, gamma, beta)
    out_bf16 = jax.block_until_ready(out_bf16)
    assert out_bf16.shape == (N, Cout, H // 2, W // 2), out_bf16.shape
    errbf = jnp.max(jnp.abs(out_bf16.astype(jnp.float32) - ref))
    assert jnp.allclose(out_bf16.astype(jnp.float32), ref, atol=8e-2, rtol=8e-2), \
        f"bf16 max abs err = {errbf}"

    print("KERNEL_OK")
</pallas_src>

<mosaic_0001>
module attributes {stable_mosaic.version = 11 : i64} {
  func.func @_conv_pool_stats_kernel(%arg0: i32, %arg1: i32, %arg2: memref<1x1x10x18x4xf32, #tpu.memory_space<vmem>>, %arg3: memref<9x4x8xf32, #tpu.memory_space<vmem>>, %arg4: memref<1x1x4x64xf32, #tpu.memory_space<vmem>>, %arg5: memref<1x1x4x64xf32, #tpu.memory_space<vmem>>, %arg6: memref<1x1x1x8xf32, #tpu.memory_space<vmem>>, %arg7: memref<1x1x1x8xf32, #tpu.memory_space<vmem>>) attributes {dimension_semantics = [#tpu.dimension_semantics<parallel>, #tpu.dimension_semantics<parallel>], iteration_bounds = array<i64: 2, 2>, scalar_prefetch = 0 : i64, scratch_operands = 0 : i64, tpu.core_type = #tpu.core_type<tc>, window_params = [{transform_indices = @transform_0, window_bounds = array<i64: 1, 1, 10, 18, 4>}, {pipeline_mode = #tpu.pipeline_mode<synchronous>, transform_indices = @transform_1, window_bounds = array<i64: 9, 4, 8>}, {transform_indices = @transform_2, window_bounds = array<i64: 1, 1, 4, 64>}, {transform_indices = @transform_3, window_bounds = array<i64: 1, 1, 4, 64>}, {transform_indices = @transform_4, window_bounds = array<i64: 1, 1, 1, 8>}, {transform_indices = @transform_5, window_bounds = array<i64: 1, 1, 1, 8>}]} {
    %c0 = arith.constant 0 : index
    %c0_0 = arith.constant 0 : index
    %c0_1 = arith.constant 0 : index
    %c0_2 = arith.constant 0 : index
    %c0_3 = arith.constant 0 : index
    %0 = vector.load %arg2[%c0, %c0_0, %c0_1, %c0_2, %c0_3] : memref<1x1x10x18x4xf32, #tpu.memory_space<vmem>>, vector<1x1x10x18x4xf32>
    %1 = vector.shape_cast %0 : vector<1x1x10x18x4xf32> to vector<10x18x4xf32>
    %c0_4 = arith.constant 0 : index
    %c0_5 = arith.constant 0 : index
    %c0_6 = arith.constant 0 : index
    %2 = vector.load %arg3[%c0_4, %c0_5, %c0_6] : memref<9x4x8xf32, #tpu.memory_space<vmem>>, vector<9x4x8xf32>
    %cst = arith.constant 0.000000e+00 : f32
    %3 = vector.broadcast %cst : f32 to vector<128x8xf32>
    %4 = vector.extract_strided_slice %1 {offsets = [0, 0, 0], sizes = [8, 16, 4], strides = [1, 1, 1]} : vector<10x18x4xf32> to vector<8x16x4xf32>
    %5 = vector.shape_cast %4 : vector<8x16x4xf32> to vector<128x4xf32>
    %6 = vector.extract_strided_slice %2 {offsets = [0, 0, 0], sizes = [1, 4, 8], strides = [1, 1, 1]} : vector<9x4x8xf32> to vector<1x4x8xf32>
    %7 = vector.shape_cast %6 : vector<1x4x8xf32> to vector<4x8xf32>
    %cst_7 = arith.constant dense<0.000000e+00> : vector<128x8xf32>
    %8 = tpu.matmul %5, %7, %cst_7 {dimension_numbers = #tpu.dot_dimension_numbers<[1], [0], [0], [1], [0, 0, 1, 1], [], []>} : vector<128x4xf32>, vector<4x8xf32>, vector<128x8xf32> -> vector<128x8xf32>
    %9 = arith.addf %3, %8 : vector<128x8xf32>
    %10 = vector.extract_strided_slice %1 {offsets = [0, 1, 0], sizes = [8, 16, 4], strides = [1, 1, 1]} : vector<10x18x4xf32> to vector<8x16x4xf32>
    %11 = vector.shape_cast %10 : vector<8x16x4xf32> to vector<128x4xf32>
    %12 = vector.extract_strided_slice %2 {offsets = [1, 0, 0], sizes = [1, 4, 8], strides = [1, 1, 1]} : vector<9x4x8xf32> to vector<1x4x8xf32>
    %13 = vector.shape_cast %12 : vector<1x4x8xf32> to vector<4x8xf32>
    %cst_8 = arith.constant dense<0.000000e+00> : vector<128x8xf32>
    %14 = tpu.matmul %11, %13, %cst_8 {dimension_numbers = #tpu.dot_dimension_numbers<[1], [0], [0], [1], [0, 0, 1, 1], [], []>} : vector<128x4xf32>, vector<4x8xf32>, vector<128x8xf32> -> vector<128x8xf32>
    %15 = arith.addf %9, %14 : vector<128x8xf32>
    %16 = vector.extract_strided_slice %1 {offsets = [0, 2, 0], sizes = [8, 16, 4], strides = [1, 1, 1]} : vector<10x18x4xf32> to vector<8x16x4xf32>
    %17 = vector.shape_cast %16 : vector<8x16x4xf32> to vector<128x4xf32>
    %18 = vector.extract_strided_slice %2 {offsets = [2, 0, 0], sizes = [1, 4, 8], strides = [1, 1, 1]} : vector<9x4x8xf32> to vector<1x4x8xf32>
    %19 = vector.shape_cast %18 : vector<1x4x8xf32> to vector<4x8xf32>
    %cst_9 = arith.constant dense<0.000000e+00> : vector<128x8xf32>
    %20 = tpu.matmul %17, %19, %cst_9 {dimension_numbers = #tpu.dot_dimension_numbers<[1], [0], [0], [1], [0, 0, 1, 1], [], []>} : vector<128x4xf32>, vector<4x8xf32>, vector<128x8xf32> -> vector<128x8xf32>
    %21 = arith.addf %15, %20 : vector<128x8xf32>
    %22 = vector.extract_strided_slice %1 {offsets = [1, 0, 0], sizes = [8, 16, 4], strides = [1, 1, 1]} : vector<10x18x4xf32> to vector<8x16x4xf32>
    %23 = vector.shape_cast %22 : vector<8x16x4xf32> to vector<128x4xf32>
    %24 = vector.extract_strided_slice %2 {offsets = [3, 0, 0], sizes = [1, 4, 8], strides = [1, 1, 1]} : vector<9x4x8xf32> to vector<1x4x8xf32>
    %25 = vector.shape_cast %24 : vector<1x4x8xf32> to vector<4x8xf32>
    %cst_10 = arith.constant dense<0.000000e+00> : vector<128x8xf32>
    %26 = tpu.matmul %23, %25, %cst_10 {dimension_numbers = #tpu.dot_dimension_numbers<[1], [0], [0], [1], [0, 0, 1, 1], [], []>} : vector<128x4xf32>, vector<4x8xf32>, vector<128x8xf32> -> vector<128x8xf32>
    %27 = arith.addf %21, %26 : vector<128x8xf32>
    %28 = vector.extract_strided_slice %1 {offsets = [1, 1, 0], sizes = [8, 16, 4], strides = [1, 1, 1]} : vector<10x18x4xf32> to vector<8x16x4xf32>
    %29 = vector.shape_cast %28 : vector<8x16x4xf32> to vector<128x4xf32>
    %30 = vector.extract_strided_slice %2 {offsets = [4, 0, 0], sizes = [1, 4, 8], strides = [1, 1, 1]} : vector<9x4x8xf32> to vector<1x4x8xf32>
    %31 = vector.shape_cast %30 : vector<1x4x8xf32> to vector<4x8xf32>
    %cst_11 = arith.constant dense<0.000000e+00> : vector<128x8xf32>
    %32 = tpu.matmul %29, %31, %cst_11 {dimension_numbers = #tpu.dot_dimension_numbers<[1], [0], [0], [1], [0, 0, 1, 1], [], []>} : vector<128x4xf32>, vector<4x8xf32>, vector<128x8xf32> -> vector<128x8xf32>
    %33 = arith.addf %27, %32 : vector<128x8xf32>
    %34 = vector.extract_strided_slice %1 {offsets = [1, 2, 0], sizes = [8, 16, 4], strides = [1, 1, 1]} : vector<10x18x4xf32> to vector<8x16x4xf32>
    %35 = vector.shape_cast %34 : vector<8x16x4xf32> to vector<128x4xf32>
    %36 = vector.extract_strided_slice %2 {offsets = [5, 0, 0], sizes = [1, 4, 8], strides = [1, 1, 1]} : vector<9x4x8xf32> to vector<1x4x8xf32>
    %37 = vector.shape_cast %36 : vector<1x4x8xf32> to vector<4x8xf32>
    %cst_12 = arith.constant dense<0.000000e+00> : vector<128x8xf32>
    %38 = tpu.matmul %35, %37, %cst_12 {dimension_numbers = #tpu.dot_dimension_numbers<[1], [0], [0], [1], [0, 0, 1, 1], [], []>} : vector<128x4xf32>, vector<4x8xf32>, vector<128x8xf32> -> vector<128x8xf32>
    %39 = arith.addf %33, %38 : vector<128x8xf32>
    %40 = vector.extract_strided_slice %1 {offsets = [2, 0, 0], sizes = [8, 16, 4], strides = [1, 1, 1]} : vector<10x18x4xf32> to vector<8x16x4xf32>
    %41 = vector.shape_cast %40 : vector<8x16x4xf32> to vector<128x4xf32>
    %42 = vector.extract_strided_slice %2 {offsets = [6, 0, 0], sizes = [1, 4, 8], strides = [1, 1, 1]} : vector<9x4x8xf32> to vector<1x4x8xf32>
    %43 = vector.shape_cast %42 : vector<1x4x8xf32> to vector<4x8xf32>
    %cst_13 = arith.constant dense<0.000000e+00> : vector<128x8xf32>
    %44 = tpu.matmul %41, %43, %cst_13 {dimension_numbers = #tpu.dot_dimension_numbers<[1], [0], [0], [1], [0, 0, 1, 1], [], []>} : vector<128x4xf32>, vector<4x8xf32>, vector<128x8xf32> -> vector<128x8xf32>
    %45 = arith.addf %39, %44 : vector<128x8xf32>
    %46 = vector.extract_strided_slice %1 {offsets = [2, 1, 0], sizes = [8, 16, 4], strides = [1, 1, 1]} : vector<10x18x4xf32> to vector<8x16x4xf32>
    %47 = vector.shape_cast %46 : vector<8x16x4xf32> to vector<128x4xf32>
    %48 = vector.extract_strided_slice %2 {offsets = [7, 0, 0], sizes = [1, 4, 8], strides = [1, 1, 1]} : vector<9x4x8xf32> to vector<1x4x8xf32>
    %49 = vector.shape_cast %48 : vector<1x4x8xf32> to vector<4x8xf32>
    %cst_14 = arith.constant dense<0.000000e+00> : vector<128x8xf32>
    %50 = tpu.matmul %47, %49, %cst_14 {dimension_numbers = #tpu.dot_dimension_numbers<[1], [0], [0], [1], [0, 0, 1, 1], [], []>} : vector<128x4xf32>, vector<4x8xf32>, vector<128x8xf32> -> vector<128x8xf32>
    %51 = arith.addf %45, %50 : vector<128x8xf32>
    %52 = vector.extract_strided_slice %1 {offsets = [2, 2, 0], sizes = [8, 16, 4], strides = [1, 1, 1]} : vector<10x18x4xf32> to vector<8x16x4xf32>
    %53 = vector.shape_cast %52 : vector<8x16x4xf32> to vector<128x4xf32>
    %54 = vector.extract_strided_slice %2 {offsets = [8, 0, 0], sizes = [1, 4, 8], strides = [1, 1, 1]} : vector<9x4x8xf32> to vector<1x4x8xf32>
    %55 = vector.shape_cast %54 : vector<1x4x8xf32> to vector<4x8xf32>
    %cst_15 = arith.constant dense<0.000000e+00> : vector<128x8xf32>
    %56 = tpu.matmul %53, %55, %cst_15 {dimension_numbers = #tpu.dot_dimension_numbers<[1], [0], [0], [1], [0, 0, 1, 1], [], []>} : vector<128x4xf32>, vector<4x8xf32>, vector<128x8xf32> -> vector<128x8xf32>
    %57 = arith.addf %51, %56 : vector<128x8xf32>
    %cst_16 = arith.constant dense<0.000000e+00> : vector<8xf32>
    %58 = vector.multi_reduction <add>, %57, %cst_16 [0] : vector<128x8xf32> to vector<8xf32>
    %59 = vector.shape_cast %58 : vector<8xf32> to vector<1x1x1x8xf32>
    %c0_17 = arith.constant 0 : index
    %c0_18 = arith.constant 0 : index
    %c0_19 = arith.constant 0 : index
    %c0_20 = arith.constant 0 : index
    %60 = vector.load %arg6[%c0_17, %c0_18, %c0_19, %c0_20] : memref<1x1x1x8xf32, #tpu.memory_space<vmem>>, vector<1x1x1x8xf32>
    tpu.vector_store %arg6[%c0_17, %c0_18, %c0_19, %c0_20], %59 {strides = array<i32>} : memref<1x1x1x8xf32, #tpu.memory_space<vmem>>, vector<1x1x1x8xf32>,
    %61 = arith.mulf %57, %57 : vector<128x8xf32>
    %cst_21 = arith.constant dense<0.000000e+00> : vector<8xf32>
    %62 = vector.multi_reduction <add>, %61, %cst_21 [0] : vector<128x8xf32> to vector<8xf32>
    %63 = vector.shape_cast %62 : vector<8xf32> to vector<1x1x1x8xf32>
    %c0_22 = arith.constant 0 : index
    %c0_23 = arith.constant 0 : index
    %c0_24 = arith.constant 0 : index
    %c0_25 = arith.constant 0 : index
    %64 = vector.load %arg7[%c0_22, %c0_23, %c0_24, %c0_25] : memref<1x1x1x8xf32, #tpu.memory_space<vmem>>, vector<1x1x1x8xf32>
    tpu.vector_store %arg7[%c0_22, %c0_23, %c0_24, %c0_25], %63 {strides = array<i32>} : memref<1x1x1x8xf32, #tpu.memory_space<vmem>>, vector<1x1x1x8xf32>,
    %65 = vector.shape_cast %57 : vector<128x8xf32> to vector<4x2x8x2x8xf32>
    %66 = vector.extract_strided_slice %65 {offsets = [0, 0, 0, 0, 0], sizes = [4, 1, 8, 2, 8], strides = [1, 1, 1, 1, 1]} : vector<4x2x8x2x8xf32> to vector<4x1x8x2x8xf32>
    %67 = vector.shape_cast %66 : vector<4x1x8x2x8xf32> to vector<4x8x2x8xf32>
    %68 = vector.extract_strided_slice %65 {offsets = [0, 1, 0, 0, 0], sizes = [4, 1, 8, 2, 8], strides = [1, 1, 1, 1, 1]} : vector<4x2x8x2x8xf32> to vector<4x1x8x2x8xf32>
    %69 = vector.shape_cast %68 : vector<4x1x8x2x8xf32> to vector<4x8x2x8xf32>
    %70 = arith.maximumf %67, %69 : vector<4x8x2x8xf32>
    %71 = vector.extract_strided_slice %65 {offsets = [0, 0, 0, 0, 0], sizes = [4, 1, 8, 2, 8], strides = [1, 1, 1, 1, 1]} : vector<4x2x8x2x8xf32> to vector<4x1x8x2x8xf32>
    %72 = vector.shape_cast %71 : vector<4x1x8x2x8xf32> to vector<4x8x2x8xf32>
    %73 = vector.extract_strided_slice %65 {offsets = [0, 1, 0, 0, 0], sizes = [4, 1, 8, 2, 8], strides = [1, 1, 1, 1, 1]} : vector<4x2x8x2x8xf32> to vector<4x1x8x2x8xf32>
    %74 = vector.shape_cast %73 : vector<4x1x8x2x8xf32> to vector<4x8x2x8xf32>
    %75 = arith.minimumf %72, %74 : vector<4x8x2x8xf32>
    %76 = vector.extract_strided_slice %70 {offsets = [0, 0, 0, 0], sizes = [4, 8, 1, 8], strides = [1, 1, 1, 1]} : vector<4x8x2x8xf32> to vector<4x8x1x8xf32>
    %77 = vector.shape_cast %76 : vector<4x8x1x8xf32> to vector<4x8x8xf32>
    %78 = vector.extract_strided_slice %70 {offsets = [0, 0, 1, 0], sizes = [4, 8, 1, 8], strides = [1, 1, 1, 1]} : vector<4x8x2x8xf32> to vector<4x8x1x8xf32>
    %79 = vector.shape_cast %78 : vector<4x8x1x8xf32> to vector<4x8x8xf32>
    %80 = arith.maximumf %77, %79 : vector<4x8x8xf32>
    %81 = vector.extract_strided_slice %75 {offsets = [0, 0, 0, 0], sizes = [4, 8, 1, 8], strides = [1, 1, 1, 1]} : vector<4x8x2x8xf32> to vector<4x8x1x8xf32>
    %82 = vector.shape_cast %81 : vector<4x8x1x8xf32> to vector<4x8x8xf32>
    %83 = vector.extract_strided_slice %75 {offsets = [0, 0, 1, 0], sizes = [4, 8, 1, 8], strides = [1, 1, 1, 1]} : vector<4x8x2x8xf32> to vector<4x8x1x8xf32>
    %84 = vector.shape_cast %83 : vector<4x8x1x8xf32> to vector<4x8x8xf32>
    %85 = arith.minimumf %82, %84 : vector<4x8x8xf32>
    %86 = vector.shape_cast %80 : vector<4x8x8xf32> to vector<1x1x4x64xf32>
    %c0_26 = arith.constant 0 : index
    %c0_27 = arith.constant 0 : index
    %c0_28 = arith.constant 0 : index
    %c0_29 = arith.constant 0 : index
    %87 = vector.load %arg4[%c0_26, %c0_27, %c0_28, %c0_29] : memref<1x1x4x64xf32, #tpu.memory_space<vmem>>, vector<1x1x4x64xf32>
    tpu.vector_store %arg4[%c0_26, %c0_27, %c0_28, %c0_29], %86 {strides = array<i32>} : memref<1x1x4x64xf32, #tpu.memory_space<vmem>>, vector<1x1x4x64xf32>,
    %88 = vector.shape_cast %85 : vector<4x8x8xf32> to vector<1x1x4x64xf32>
    %c0_30 = arith.constant 0 : index
    %c0_31 = arith.constant 0 : index
    %c0_32 = arith.constant 0 : index
    %c0_33 = arith.constant 0 : index
    %89 = vector.load %arg5[%c0_30, %c0_31, %c0_32, %c0_33] : memref<1x1x4x64xf32, #tpu.memory_space<vmem>>, vector<1x1x4x64xf32>
    tpu.vector_store %arg5[%c0_30, %c0_31, %c0_32, %c0_33], %88 {strides = array<i32>} : memref<1x1x4x64xf32, #tpu.memory_space<vmem>>, vector<1x1x4x64xf32>,
    return
  }
  func.func @transform_0(%arg0: i32, %arg1: i32) -> (i32, i32, i32, i32, i32) {
    %c0_i32 = arith.constant 0 : i32
    %c0_i32_0 = arith.constant 0 : i32
    %c0_i32_1 = arith.constant 0 : i32
    %c0_i32_2 = arith.constant 0 : i32
    return %arg0, %arg1, %c0_i32, %c0_i32_0, %c0_i32_1 : i32, i32, i32, i32, i32
  }
  func.func @transform_1(%arg0: i32, %arg1: i32) -> (i32, i32, i32) {
    %c0_i32 = arith.constant 0 : i32
    %c0_i32_0 = arith.constant 0 : i32
    %c0_i32_1 = arith.constant 0 : i32
    %c0_i32_2 = arith.constant 0 : i32
    return %c0_i32, %c0_i32_0, %c0_i32_1 : i32, i32, i32
  }
  func.func @transform_2(%arg0: i32, %arg1: i32) -> (i32, i32, i32, i32) {
    %c0_i32 = arith.constant 0 : i32
    %c0_i32_0 = arith.constant 0 : i32
    %c0_i32_1 = arith.constant 0 : i32
    return %arg0, %arg1, %c0_i32, %c0_i32_0 : i32, i32, i32, i32
  }
  func.func @transform_3(%arg0: i32, %arg1: i32) -> (i32, i32, i32, i32) {
    %c0_i32 = arith.constant 0 : i32
    %c0_i32_0 = arith.constant 0 : i32
    %c0_i32_1 = arith.constant 0 : i32
    return %arg0, %arg1, %c0_i32, %c0_i32_0 : i32, i32, i32, i32
  }
  func.func @transform_4(%arg0: i32, %arg1: i32) -> (i32, i32, i32, i32) {
    %c0_i32 = arith.constant 0 : i32
    %c0_i32_0 = arith.constant 0 : i32
    %c0_i32_1 = arith.constant 0 : i32
    return %arg0, %arg1, %c0_i32, %c0_i32_0 : i32, i32, i32, i32
  }
  func.func @transform_5(%arg0: i32, %arg1: i32) -> (i32, i32, i32, i32) {
    %c0_i32 = arith.constant 0 : i32
    %c0_i32_0 = arith.constant 0 : i32
    %c0_i32_1 = arith.constant 0 : i32
    return %arg0, %arg1, %c0_i32, %c0_i32_0 : i32, i32, i32, i32
  }
}

</mosaic_0001>

<bundles_post_ra>
// kernel: tpu_custom_call.1
= control target key start
LH: loop header
LB: loop body
LE: loop exit
PB: predicated region body
PF: predicated region fallthrough
CT: control target
= control target key end

     0   :  { %s4669_s0 = inlined_call_operand.vmem [shape: f32[2,2,10,18,4], index: 0, kind: input, shape index: {}]   ;;  %s4670_s1 = inlined_call_operand.vmem [shape: f32[9,4,8], index: 1, kind: input, shape index: {}]   ;;  %s4671_s2 = inlined_call_operand.hbm [shape: f32[2,2,4,64], index: 2, kind: output, shape index: {0}]   ;;  %s4672_s3 = inlined_call_operand.hbm [shape: f32[2,2,4,64], index: 3, kind: output, shape index: {1}]   ;;  %s4673_s4 = inlined_call_operand.hbm [shape: f32[2,2,1,8], index: 4, kind: output, shape index: {2}]   ;;  %s4674_s5 = inlined_call_operand.hbm [shape: f32[2,2,1,8], index: 5, kind: output, shape index: {3}]  }
   0x1   :  { %4680 = sst [smem:[#allocation17_spill]] %s4669_s0 }
   0x2   :  { %4681 = sst [smem:[#allocation18_spill]] %s4670_s1 }
   0x3   :  { %4682 = sst [smem:[#allocation19_spill]] %s4674_s5 }
   0x4   :  { %11 = vsyncpa [#allocation3], 0 }
   0x5   :  { %13 = vsyncpa [#allocation3 + $0x1], 0 }
   0x6   :  { %14 = vsyncpa [#allocation5], 0 }
   0x7   :  { %16 = vsyncpa [#allocation5 + $0x1], 0 }
   0x8   :  { %17 = vsyncpa [#allocation8], 0 }
   0x9   :  { %19 = vsyncpa [#allocation8 + $0x1], 0  ;;  %s3318_s18 = smov 0   ;;  %s3320_s19 = smov 0  }
   0xa   :  { %s3322_s20 = smov 0   ;;  %s3324_s21 = smov 0  }
   0xb   :  { %s3326_s22 = smov 0   ;;  %s3328_s23 = smov 0  }
   0xc   :  { %s3330_s24 = smov 0   ;;  %s3332_s25 = smov 0  }
   0xd LB: > { %s4678_s26 = sadd.s32 4294967295, %s3278_s25   ;;  %s4675_s27 = sadd.s32 4294967294, %s3278_s25   ;;  %s3278_s25 = sphi %s3332_s25, %s25_s25   ;;  %s3274_s24 = sphi %s3330_s24, %s4707_s24   ;;  %s3270_s23 = sphi %s3328_s23, %s4706_s23   ;;  %s3266_s22 = sphi %s3326_s22, %s4705_s22   ;;  %s3262_s21 = sphi %s3324_s21, %s4704_s21   ;;  %s3258_s20 = sphi %s3322_s20, %s4703_s20   ;;  %s3254_s19 = sphi %s3320_s19, %s4702_s19   ;;  %s3250_s18 = sphi %s3318_s18, %s4701_s18  }
   0xe   : > { %s34_s28 = sadd.s32 1, %s3270_s23  ;;  %s37_s29 = sadd.s32 1, %s3274_s24 }
   0xf   : > { %p35_p0 = scmp.ge.s32.totalorder %s34_s28, 2  ;;  %p105_p1 = scmp.ne.s32.totalorder %s3258_s20, %s3254_s19 }
  0x10   : > { %p106_p2 = scmp.eq.s32.totalorder %s4678_s26, 3  ;;  %p111_p5 = scmp.ne.s32.totalorder %s3254_s19, %s3250_s18 }
  0x11   : > { %s4709_s28 = smov (%p35_p0, %s34_s28), 0  ;;  %s4711_s29 = smov (!%p35_p0, %s37_s29), %s3274_s24 }
  0x12   : > { %s91_s30 = ssub.s32 %s3270_s23, %s4709_s28  ;;  %p3371_p3 = por %p106_p2, %p105_p1 }
  0x13   : > { %p39_p4 = scmp.ge.s32.totalorder %s4711_s29, 2  ;;  %p112_p6 = scmp.eq.s32.totalorder %s4675_s27, 3 }
  0x14   : > { %p2762_p7 = scmp.ge.s32.totalorder %s3278_s25, 1  ;;  %p229_p9 = scmp.lt.s32.totalorder %s3278_s25, 5 }
  0x15   : > { %s4713_s29 = smov (%p39_p4, %s4711_s29), 0  ;;  %p3382_p8 = por %p112_p6, %p111_p5 }
  0x16   : > { %4684 = sst [smem:[#allocation12_spill]] %s4713_s29  ;;  %s90_s8 = ssub.s32 %s3274_s24, %s4713_s29 }
  0x17   : > { %s95_s9 = sadd.s32 1, %s3258_s20  ;;  %s92_s10 = sor.u32 %s91_s30, %s90_s8 }
  0x18   : > { %p230_p10 = pnand %p2762_p7, %p229_p9  ;;  %p93_p11 = scmp.eq.s32.totalorder %s92_s10, 0 }
  0x1a   : > { %s3391_s11 = scalar_select %p93_p11, %s3258_s20, %s95_s9  }
  0x1b   : > { %233 = sbr.rel (%p230_p10) target bundleno = 773 (0x305), region = 28 }
  0x20   : > { %s4686_s1 = sld [smem:[#allocation18_spill]]  ;;  %vm420_vm0 = vcmask 1043456   ;;  %p274_p12 = scmp.lt.s32.totalorder %s3266_s22, 1  ;;  %vm346_vm1 = vcmask 1046528   ;;  %vm387_vm2 = vcmask 31744   ;;  %vm589_vm3 = vcmask 1045504  }
  0x21   : > { %p276_p13 = scmp.lt.s32.totalorder %s3262_s21, 1  ;;  %s4687_s0 = sld [smem:[#allocation17_spill]]  ;;  %vm1300_vm4 = vcmask 64512   ;;  %vm1927_vm5 = vcmask 1041409   ;;  %vm1929_vm6 = vcmask 1043459   ;;  %vm1931_vm7 = vcmask 1045509  }
  0x22   : > { %s275_s30 = scalar_select %p274_p12, %s3266_s22, 1  ;;  %vm1933_vm8 = vcmask 1047559   ;;  %vm2057_vm9 = vcmask 1047556   ;;  %vm1338_vm10 = vcmask 57344  }
  0x23   : > { %s277_s13 = scalar_select %p276_p13, %s3262_s21, 1 }
  0x24   : > { %s2997_s14 = smul.u32 60, %s275_s30  ;;  %s4464_s8 = sand.u32 1, %s3254_s19  }
  0x25   : > { %s2996_s15 = smul.u32 30, %s277_s13  ;;  %s3282_s27 = smov 16  }
  0x26   : > { %v314_v0 = vld [vmem:[%s4686_s1 + $0x4] sm:$0xf]  ;;  %v315_v1 = vld [vmem:[%s4686_s1 + $0x8] sm:$0xf]  ;;  %v316_v2 = vld [vmem:[%s4686_s1 + $0xc] sm:$0xf] }
  0x27   : > { %2993 = vmatpush.msk.msra.mxu1 %vm420_vm0, %v314_v0  ;;  %2994 = vmatpush.msk.msra.mxu2 %vm420_vm0, %v314_v0  ;;  %v313_v3 = vld [vmem:[%s4686_s1] sm:$0xf]  ;;  %v317_v4 = vld [vmem:[%s4686_s1 + $0x10] sm:$0xf]  ;;  %s280_s16 = sadd.s32 %s2997_s14, %s2996_s15  ;;  %v319_v36 = vld [vmem:[%s4686_s1 + $0x18] sm:$0xf] }
  0x28   : > { %2995 = vmatpush.msk.msra.mxu3 %vm420_vm0, %v314_v0  ;;  %2766 = vmatpush.msk.msra.mxu0 %vm420_vm0, %v314_v0  ;;  %s2765_s17 = sshll.u32 %s280_s16, 3  ;;  %v320_v41 = vld [vmem:[%s4686_s1 + $0x1c] sm:$0xf]  ;;  %v318_v44 = vld [vmem:[%s4686_s1 + $0x14] sm:$0xf]  ;;  %s3283_s30 = smov 24  }
  0x29   : > { %2800 = vmatpush.msk.msrb.mxu2 %vm420_vm0, %v315_v1  ;;  %2783 = vmatpush.msk.msrb.mxu1 %vm420_vm0, %v313_v3  ;;  %s3423_s9 = scalar_lea.vmem %s4687_s0, %s2765_s17  ;;  %v321_v50 = vld [vmem:[%s4686_s1 + $0x20] sm:$0xf]  ;;  %s3281_s17 = smov 8  }
  0x2a   : > { %2817 = vmatpush.msk.msrb.mxu3 %vm420_vm0, %v316_v2  ;;  %2834 = vmatpush.msk.msrb.mxu0 %vm420_vm0, %v317_v4  ;;  %v3426_v5 = vld [vmem:[%s3423_s9 + $0x30] sm:$0xff]  ;;  %v3429_v6 = vld [vmem:[%s3423_s9 + $0x38] sm:$0xff]  ;;  %v3432_v7 = vld [vmem:[%s3423_s9 + $0x60] sm:$0xff]  ;;  %s273_s10 = scalar_lea.vmem [#allocation7], %s4464_s8  ;;  %s3284_s12 = smov 32  }
  0x2b   : > { %v357_v8 = vrot.slane %v3426_v5, 1  ;;  %v358_v9 = vrot.slane %v3429_v6, 1  ;;  %v3437_v10 = vld [vmem:[%s3423_s9 + $0x68] sm:$0xff]  ;;  %v367_v11 = vrot.slane %v3432_v7, 1  ;;  %v3441_v12 = vld [vmem:[%s3423_s9 + $0x90] sm:$0xff]  ;;  %v3444_v13 = vld [vmem:[%s3423_s9 + $0x98] sm:$0xff] }
  0x2c   : > { %v368_v14 = vrot.slane %v3437_v10, 1  ;;  %v377_v15 = vrot.slane %v3441_v12, 1  ;;  %v378_v16 = vrot.slane %v3444_v13, 1  ;;  %v3450_v17 = vld [vmem:[%s3423_s9 + $0x40] sm:$0x3]  ;;  %v3462_v21 = vld [vmem:[%s3423_s9 + $0x8] sm:$0xff] }
  0x2d   : > { %v3453_v18 = vld [vmem:[%s3423_s9] sm:$0xff]  ;;  %v3456_v19 = vsel %vm346_vm1, %v357_v8, %v358_v9  ;;  %v3459_v20 = vld [vmem:[%s3423_s9 + $0x70] sm:$0x3]  ;;  %v348_v25 = vrot.slane %v3462_v21, 1  ;;  %v360_v27 = vrot.slane %v3450_v17, 1  ;;  %v3494_v34 = vld [vmem:[%s3423_s9 + $0x48] sm:$0xff] }
  0x2e   : > { %v347_v22 = vrot.slane %v3453_v18, 1  ;;  %2771 = vmatmul.msk.f32.vlgmr.msra.gmra.mxu1 %vm387_vm2, %v3456_v19  ;;  %v3468_v23 = vsel %vm346_vm1, %v367_v11, %v368_v14  ;;  %v3471_v24 = vsel %vm346_vm1, %v377_v15, %v378_v16  ;;  %v3475_v26 = vld [vmem:[%s3423_s9 + $0xa0] sm:$0x3]  ;;  %v3483_v28 = vld [vmem:[%s3423_s9 + $0x10] sm:$0x3]  ;;  %v370_v29 = vrot.slane %v3459_v20, 1 }
  0x2f   : > { %2775 = vmatmul.msk.f32.vlgmr.msra.gmra.mxu2 %vm387_vm2, %v3468_v23  ;;  %2779 = vmatmul.msk.f32.vlgmr.msra.gmra.mxu3 %vm387_vm2, %v3471_v24  ;;  %v380_v31 = vrot.slane %v3475_v26, 1  ;;  %v350_v32 = vrot.slane %v3483_v28, 1  ;;  %v3491_v33 = vsel %vm346_vm1, %v358_v9, %v360_v27  ;;  %v3497_v35 = vld [vmem:[%s3423_s9 + $0x50] sm:$0xff]  ;;  %v3509_v39 = vld [vmem:[%s3423_s9 + $0x78] sm:$0xff]  ;;  %v3512_v40 = vld [vmem:[%s3423_s9 + $0x80] sm:$0xff]  ;;  %v362_v46 = vrot.slane %v3494_v34, 1 }
  0x30   : > { %v349_v30 = vsel %vm346_vm1, %v347_v22, %v348_v25  ;;  %v3503_v37 = vsel %vm346_vm1, %v368_v14, %v370_v29  ;;  %2868 = vmatpush.msk.msra.mxu2 %vm420_vm0, %v319_v36  ;;  %v3519_v42 = vld [vmem:[%s3423_s9 + $0xa8] sm:$0xff]  ;;  %v3522_v43 = vld [vmem:[%s3423_s9 + $0xb0] sm:$0xff]  ;;  %2885 = vmatpush.msk.msra.mxu3 %vm420_vm0, %v320_v41  ;;  %v363_v47 = vrot.slane %v3497_v35, 1  ;;  %v286_v48 = vld [vmem:[%s3423_s9 + $0x18] sm:$0xff]  ;;  %v372_v51 = vrot.slane %v3509_v39, 1  ;;  %s3285_s13 = smov 40  }
  0x31   : > { %2767 = vmatmul.msk.f32.vlgmr.msra.gmra.mxu0 %vm387_vm2, %v349_v30  ;;  %v3506_v38 = vsel %vm346_vm1, %v378_v16, %v380_v31  ;;  %v351_v45 = vsel %vm346_vm1, %v348_v25, %v350_v32  ;;  %v287_v49 = vld [vmem:[%s3423_s9 + $0x20] sm:$0xff]  ;;  %v373_v52 = vrot.slane %v3512_v40, 1  ;;  %v382_v53 = vrot.slane %v3519_v42, 1  ;;  %2851 = vmatpush.msk.msra.mxu1 %vm420_vm0, %v318_v44  ;;  %v3559_v60 = vld [vmem:[%s3423_s9 + $0x58] sm:$0x3]  ;;  %s3286_s14 = smov 48  }
  0x32   : > { %v383_v54 = vrot.slane %v3522_v43, 1  ;;  %2902 = vmatpush.msk.msra.mxu0 %vm420_vm0, %v321_v50  ;;  %v352_v55 = vrot.slane %v286_v48, 1  ;;  %v353_v56 = vrot.slane %v287_v49, 1  ;;  %v3550_v57 = vsel %vm346_vm1, %v362_v46, %v363_v47  ;;  %v3562_v61 = vld [vmem:[%s3423_s9 + $0x88] sm:$0x3]  ;;  %s2985_s15 = sshll.u32 %s3266_s22, 1 }
  0x33   : > { %v3553_v58 = vsel %vm346_vm1, %v372_v51, %v373_v52  ;;  %v3565_v62 = vld [vmem:[%s3423_s9 + $0xb8] sm:$0x3]  ;;  %v365_v0 = vrot.slane %v3559_v60, 1  ;;  %v288_v1 = vld [vmem:[%s3423_s9 + $0x28] sm:$0x3]  ;;  %v375_v2 = vrot.slane %v3562_v61, 1  ;;  %s4532_s16 = sadd.s32 %s3262_s21, %s2985_s15 }
  0x34   : > { %v3556_v59 = vsel %vm346_vm1, %v382_v53, %v383_v54  ;;  %v354_v63 = vsel %vm346_vm1, %v352_v55, %v353_v56  ;;  %v385_v3 = vrot.slane %v3565_v62, 1  ;;  %v355_v4 = vrot.slane %v288_v1, 1  ;;  %s4696_s5 = sld [smem:[#allocation19_spill]] }
  0x35   : > { %v3580_v8 = vsel %vm346_vm1, %v363_v47, %v365_v0  ;;  %v3583_v9 = vsel %vm346_vm1, %v373_v52, %v375_v2  ;;  %v590_v15 = vrot.slane %v3453_v18, 2  ;;  %v591_v16 = vrot.slane %v3462_v21, 2 }
  0x36   : > { %2772 = vmatmul.msk.f32.gmra.mxu1 %vm387_vm2, %v3491_v33  ;;  %v3586_v11 = vsel %vm346_vm1, %v383_v54, %v385_v3  ;;  %v356_v14 = vsel %vm346_vm1, %v353_v56, %v355_v4  ;;  %v593_v25 = vrot.slane %v3483_v28, 2  ;;  %v595_v29 = vrot.slane %v286_v48, 2 }
  0x37   : > { %2776 = vmatmul.msk.f32.gmra.mxu2 %vm387_vm2, %v3503_v37  ;;  %2780 = vmatmul.msk.f32.gmra.mxu3 %vm387_vm2, %v3506_v38  ;;  %v592_v22 = vsel %vm589_vm3, %v590_v15, %v591_v16  ;;  %v596_v30 = vrot.slane %v287_v49, 2  ;;  %v600_v31 = vrot.slane %v3426_v5, 2  ;;  %v601_v32 = vrot.slane %v3429_v6, 2 }
  0x38   : > { %v594_v27 = vsel %vm589_vm3, %v591_v16, %v593_v25  ;;  %v603_v41 = vrot.slane %v3450_v17, 2  ;;  %v606_v46 = vrot.slane %v3497_v35, 2  ;;  %v608_v47 = vrot.slane %v3559_v60, 2 }
  0x39   : > { %2768 = vmatmul.msk.f32.gmra.mxu0 %vm387_vm2, %v351_v45  ;;  %v3634_v36 = vsel %vm589_vm3, %v600_v31, %v601_v32  ;;  %v605_v45 = vrot.slane %v3494_v34, 2  ;;  %v611_v50 = vrot.slane %v3437_v10, 2  ;;  %v613_v52 = vrot.slane %v3459_v20, 2 }
  0x3a   : > { %v3646_v44 = vsel %vm589_vm3, %v601_v32, %v603_v41  ;;  %v615_v54 = vrot.slane %v3509_v39, 2  ;;  %v616_v55 = vrot.slane %v3512_v40, 2  ;;  %v618_v56 = vrot.slane %v3562_v61, 2  ;;  %s3112_s15 = scalar_lea.hbm %s4696_s5, 4 }
  0x3b   : > { %v3659_v17 = vsel %vm589_vm3, %v605_v45, %v606_v46  ;;  %v3696_v53 = vsel %vm589_vm3, %v611_v50, %v613_v52  ;;  %v621_v0 = vrot.slane %v3444_v13, 2  ;;  %v623_v3 = vrot.slane %v3475_v26, 2  ;;  %v3763_v26 = vld [vmem:[%s3423_s9 + $0xc8] sm:$0xff] }
  0x3c   : > { %v3709_v20 = vsel %vm589_vm3, %v615_v54, %v616_v55  ;;  %v3721_v60 = vsel %vm589_vm3, %v616_v55, %v618_v56  ;;  %v625_v25 = vrot.slane %v3519_v42, 2  ;;  %v838_v32 = vrot.slane %v3763_v26, 1 }
  0x3d   : > { %v3754_v16 = vsel %vm589_vm3, %v621_v0, %v623_v3 }
  0x3e   : > { %2773 = vmatmul.msk.f32.gmra.mxu1 %vm387_vm2, %v3550_v57 }
  0x3f   : > { %2777 = vmatmul.msk.f32.gmra.mxu2 %vm387_vm2, %v3553_v58  ;;  %2781 = vmatmul.msk.f32.gmra.mxu3 %vm387_vm2, %v3556_v59 }
  0x41   : > { %2769 = vmatmul.msk.f32.gmra.mxu0 %vm387_vm2, %v354_v63 }
  0x46   : > { %2774 = vmatmul.msk.f32.gmra.mxu1 %vm387_vm2, %v3580_v8 }
  0x47   : > { %2778 = vmatmul.msk.f32.gmra.mxu2 %vm387_vm2, %v3583_v9  ;;  %2782 = vmatmul.msk.f32.gmra.mxu3 %vm387_vm2, %v3586_v11 }
  0x49   : > { %2770 = vmatmul.msk.f32.gmra.mxu0 %vm387_vm2, %v356_v14 }
  0x4e   : > { %2784 = vmatmul.msk.f32.vlgmr.msrb.gmra.mxu1 %vm387_vm2, %v3453_v18  ;;  %v3612_v18 = vsel %vm589_vm3, %v595_v29, %v596_v30  ;;  %v3768_v29 = vld [vmem:[%s3423_s9 + $0xc0] sm:$0xff] }
  0x4f   : > { %2801 = vmatmul.msk.f32.vlgmr.msrb.gmra.mxu2 %vm387_vm2, %v592_v22  ;;  %2818 = vmatmul.msk.f32.vlgmr.msrb.gmra.mxu3 %vm387_vm2, %v286_v48  ;;  %v837_v31 = vrot.slane %v3768_v29, 1 }
  0x51   : > { %2835 = vmatmul.msk.f32.vlgmr.msrb.gmra.mxu0 %vm387_vm2, %v354_v63  ;;  %v620_v63 = vrot.slane %v3441_v12, 2 }
  0x56   : > { %2785 = vmatmul.msk.f32.gmra.mxu1 %vm387_vm2, %v3462_v21  ;;  %v598_v21 = vrot.slane %v288_v1, 2  ;;  %v3736_v1 = vsel %vm589_vm3, %v620_v63, %v621_v0 }
  0x57   : > { %2802 = vmatmul.msk.f32.gmra.mxu2 %vm387_vm2, %v594_v27  ;;  %2819 = vmatmul.msk.f32.gmra.mxu3 %vm387_vm2, %v287_v49  ;;  %v626_v27 = vrot.slane %v3522_v43, 2 }
  0x58   : > { %v3622_v28 = vsel %vm589_vm3, %v596_v30, %v598_v21 }
  0x59   : > { %2836 = vmatmul.msk.f32.gmra.mxu0 %vm387_vm2, %v356_v14  ;;  %v3781_v45 = vsel %vm589_vm3, %v625_v25, %v626_v27 }
  0x5e   : > { %2786 = vmatmul.msk.f32.gmra.mxu1 %vm387_vm2, %v286_v48  ;;  %v3671_v48 = vsel %vm589_vm3, %v606_v46, %v608_v47  ;;  %v3786_v47 = vsel %vm346_vm1, %v837_v31, %v838_v32 }
  0x5f   : > { %2803 = vmatmul.msk.f32.gmra.mxu2 %vm387_vm2, %v3612_v18  ;;  %2820 = vmatmul.msk.f32.gmra.mxu3 %vm387_vm2, %v3426_v5 }
  0x61   : > { %2837 = vmatmul.msk.f32.gmra.mxu0 %vm387_vm2, %v3456_v19 }
  0x66   : > { %2787 = vmatmul.msk.f32.gmra.mxu1 %vm387_vm2, %v287_v49  ;;  %v610_v49 = vrot.slane %v3432_v7, 2 }
  0x67   : > { %2804 = vmatmul.msk.f32.gmra.mxu2 %vm387_vm2, %v3622_v28  ;;  %2821 = vmatmul.msk.f32.gmra.mxu3 %vm387_vm2, %v3429_v6 }
  0x68   : > { %v3684_v51 = vsel %vm589_vm3, %v610_v49, %v611_v50  ;;  %v3793_v49 = vld [vmem:[%s3423_s9 + $0xd0] sm:$0x3]  ;;  %v628_v50 = vrot.slane %v3565_v62, 2 }
  0x69   : > { %2838 = vmatmul.msk.f32.gmra.mxu0 %vm387_vm2, %v3491_v33  ;;  %v840_v55 = vrot.slane %v3793_v49, 1 }
  0x6a   : > { %v3806_v63 = vsel %vm589_vm3, %v626_v27, %v628_v50 }
  0x6b   : > { %v3811_v62 = vsel %vm346_vm1, %v838_v32, %v840_v55 }
  0x6c   : > { %4690 = vst [vmem:[#allocation15_spill] sm:$0xff] %v3811_v62 }
  0x6e   : > { %2788 = vmatmul.msk.f32.gmra.mxu1 %vm387_vm2, %v3426_v5 }
  0x6f   : > { %2805 = vmatmul.msk.f32.gmra.mxu2 %vm387_vm2, %v3634_v36  ;;  %2822 = vmatmul.msk.f32.gmra.mxu3 %vm387_vm2, %v3494_v34 }
  0x71   : > { %2839 = vmatmul.msk.f32.gmra.mxu0 %vm387_vm2, %v3550_v57 }
  0x76   : > { %2789 = vmatmul.msk.f32.gmra.mxu1 %vm387_vm2, %v3429_v6 }
  0x77   : > { %2806 = vmatmul.msk.f32.gmra.mxu2 %vm387_vm2, %v3646_v44  ;;  %2823 = vmatmul.msk.f32.gmra.mxu3 %vm387_vm2, %v3497_v35 }
  0x79   : > { %2840 = vmatmul.msk.f32.gmra.mxu0 %vm387_vm2, %v3580_v8 }
  0x7e   : > { %2790 = vmatmul.msk.f32.gmra.mxu1 %vm387_vm2, %v3494_v34 }
  0x7f   : > { %2807 = vmatmul.msk.f32.gmra.mxu2 %vm387_vm2, %v3659_v17  ;;  %2824 = vmatmul.msk.f32.gmra.mxu3 %vm387_vm2, %v3432_v7 }
  0x81   : > { %2841 = vmatmul.msk.f32.gmra.mxu0 %vm387_vm2, %v3468_v23 }
  0x86   : > { %2791 = vmatmul.msk.f32.gmra.mxu1 %vm387_vm2, %v3497_v35 }
  0x87   : > { %2808 = vmatmul.msk.f32.gmra.mxu2 %vm387_vm2, %v3671_v48  ;;  %2825 = vmatmul.msk.f32.gmra.mxu3 %vm387_vm2, %v3437_v10 }
  0x89   : > { %2842 = vmatmul.msk.f32.gmra.mxu0 %vm387_vm2, %v3503_v37 }
  0x8e   : > { %2792 = vmatmul.msk.f32.gmra.mxu1 %vm387_vm2, %v3432_v7 }
  0x8f   : > { %2809 = vmatmul.msk.f32.gmra.mxu2 %vm387_vm2, %v3684_v51  ;;  %2826 = vmatmul.msk.f32.gmra.mxu3 %vm387_vm2, %v3509_v39 }
  0x91   : > { %2843 = vmatmul.msk.f32.gmra.mxu0 %vm387_vm2, %v3553_v58 }
  0x96   : > { %2793 = vmatmul.msk.f32.gmra.mxu1 %vm387_vm2, %v3437_v10 }
  0x97   : > { %2810 = vmatmul.msk.f32.gmra.mxu2 %vm387_vm2, %v3696_v53  ;;  %2827 = vmatmul.msk.f32.gmra.mxu3 %vm387_vm2, %v3512_v40 }
  0x99   : > { %2844 = vmatmul.msk.f32.gmra.mxu0 %vm387_vm2, %v3583_v9 }
  0x9e   : > { %2794 = vmatmul.msk.f32.gmra.mxu1 %vm387_vm2, %v3509_v39 }
  0x9f   : > { %2811 = vmatmul.msk.f32.gmra.mxu2 %vm387_vm2, %v3709_v20  ;;  %2828 = vmatmul.msk.f32.gmra.mxu3 %vm387_vm2, %v3441_v12 }
  0xa1   : > { %2845 = vmatmul.msk.f32.gmra.mxu0 %vm387_vm2, %v3471_v24 }
  0xa6   : > { %2795 = vmatmul.msk.f32.gmra.mxu1 %vm387_vm2, %v3512_v40 }
  0xa7   : > { %2812 = vmatmul.msk.f32.gmra.mxu2 %vm387_vm2, %v3721_v60  ;;  %2829 = vmatmul.msk.f32.gmra.mxu3 %vm387_vm2, %v3444_v13 }
  0xa9   : > { %2846 = vmatmul.msk.f32.gmra.mxu0 %vm387_vm2, %v3506_v38 }
  0xab   : > { %v3733_v61 = vpop.f32.mrf.mxu1 }
  0xae   : > { %2796 = vmatmul.msk.f32.gmra.mxu1 %vm387_vm2, %v3441_v12  ;;  %v441_v2 = vpop.f32.mrf.mxu0 }
  0xaf   : > { %2813 = vmatmul.msk.f32.gmra.mxu2 %vm387_vm2, %v3736_v1  ;;  %2830 = vmatmul.msk.f32.gmra.mxu3 %vm387_vm2, %v3519_v42 }
  0xb1   : > { %2847 = vmatmul.msk.f32.gmra.mxu0 %vm387_vm2, %v3556_v59 }
  0xb2   : > { %v3747_v4 = vpop.f32.mrf.mxu2  ;;  %v3749_v14 = vpop.f32.mrf.mxu3 }
  0xb3   : > { %v3751_v15 = vpop.f32.mrf.mxu1 }
  0xb6   : > { %2797 = vmatmul.msk.f32.gmra.mxu1 %vm387_vm2, %v3444_v13  ;;  %v444_v22 = vpop.f32.mrf.mxu0 }
  0xb7   : > { %2814 = vmatmul.msk.f32.gmra.mxu2 %vm387_vm2, %v3754_v16  ;;  %2831 = vmatmul.msk.f32.gmra.mxu3 %vm387_vm2, %v3522_v43 }
  0xb9   : > { %2848 = vmatmul.msk.f32.gmra.mxu0 %vm387_vm2, %v3586_v11 }
  0xba   : > { %v3772_v30 = vpop.f32.mrf.mxu2  ;;  %v3774_v21 = vpop.f32.mrf.mxu3 }
  0xbb   : > { %4688 = vst [vmem:[#allocation13_spill] sm:$0xff] %v3774_v21  ;;  %v3778_v41 = vpop.f32.mrf.mxu1 }
  0xbe   : > { %2798 = vmatmul.msk.f32.gmra.mxu1 %vm387_vm2, %v3519_v42  ;;  %v447_v46 = vpop.f32.mrf.mxu0 }
  0xbf   : > { %2815 = vmatmul.msk.f32.gmra.mxu2 %vm387_vm2, %v3781_v45  ;;  %2832 = vmatmul.msk.f32.gmra.mxu3 %vm387_vm2, %v3768_v29 }
  0xc1   : > { %2849 = vmatmul.msk.f32.gmra.mxu0 %vm387_vm2, %v3786_v47 }
  0xc2   : > { %v3798_v52 = vpop.f32.mrf.mxu2  ;;  %v3800_v54 = vpop.f32.mrf.mxu3 }
  0xc3   : > { %4689 = vst [vmem:[#allocation14_spill] sm:$0xff] %v3800_v54  ;;  %v3803_v56 = vpop.f32.mrf.mxu1 }
  0xc6   : > { %2799 = vmatmul.msk.f32.gmra.mxu1 %vm387_vm2, %v3522_v43  ;;  %v450_v0 = vpop.f32.mrf.mxu0 }
  0xc7   : > { %2816 = vmatmul.msk.f32.gmra.mxu2 %vm387_vm2, %v3806_v63  ;;  %2833 = vmatmul.msk.f32.gmra.mxu3 %vm387_vm2, %v3763_v26 }
  0xc9   : > { %2850 = vmatmul.msk.f32.gmra.mxu0 %vm387_vm2, %v3811_v62 }
  0xca   : > { %v3819_v3 = vpop.f32.mrf.mxu2  ;;  %v3821_v25 = vpop.f32.mrf.mxu3 }
  0xcb   : > { %4691 = vst [vmem:[#allocation16_spill] sm:$0xff] %v3821_v25  ;;  %v541_v27 = vpop.f32.mrf.mxu1 }
  0xcc   : > { %v542_v32 = vadd.f32 %v541_v27, %v441_v2 }
  0xce   : > { %2852 = vmatmul.msk.f32.vlgmr.msra.gmra.mxu1 %vm387_vm2, %v3612_v18  ;;  %v866_v31 = vpop.f32.mrf.mxu0 }
  0xcf   : > { %2869 = vmatmul.msk.f32.vlgmr.msra.gmra.mxu2 %vm387_vm2, %v3426_v5  ;;  %2886 = vmatmul.msk.f32.vlgmr.msra.gmra.mxu3 %vm387_vm2, %v3456_v19 }
  0xd1   : > { %2903 = vmatmul.msk.f32.vlgmr.msra.gmra.mxu0 %vm387_vm2, %v3634_v36 }
  0xd2   : > { %v682_v50 = vpop.f32.mrf.mxu2  ;;  %v772_v55 = vpop.f32.mrf.mxu3 }
  0xd3   : > { %v730_v54 = vadd.f32 %v682_v50, %v542_v32  ;;  %v544_v21 = vpop.f32.mrf.mxu1 }
  0xd4   : > { %v545_v5 = vadd.f32 %v544_v21, %v444_v22 }
  0xd5   : > { %v820_v25 = vadd.f32 %v772_v55, %v730_v54 }
  0xd6   : > { %2853 = vmatmul.msk.f32.gmra.mxu1 %vm387_vm2, %v3622_v28  ;;  %v869_v18 = vpop.f32.mrf.mxu0 }
  0xd7   : > { %v3833_v62 = vadd.f32 %v866_v31, %v820_v25  ;;  %2870 = vmatmul.msk.f32.gmra.mxu2 %vm387_vm2, %v3429_v6  ;;  %2887 = vmatmul.msk.f32.gmra.mxu3 %vm387_vm2, %v3491_v33 }
  0xd9   : > { %2904 = vmatmul.msk.f32.gmra.mxu0 %vm387_vm2, %v3646_v44 }
  0xda   : > { %v685_v19 = vpop.f32.mrf.mxu2  ;;  %v775_v2 = vpop.f32.mrf.mxu3 }
  0xdb   : > { %v731_v27 = vadd.f32 %v685_v19, %v545_v5  ;;  %v547_v54 = vpop.f32.mrf.mxu1 }
  0xdc   : > { %v548_v6 = vadd.f32 %v547_v54, %v447_v46 }
  0xdd   : > { %v821_v32 = vadd.f32 %v775_v2, %v731_v27 }
  0xde   : > { %2854 = vmatmul.msk.f32.gmra.mxu1 %vm387_vm2, %v3634_v36  ;;  %v872_v28 = vpop.f32.mrf.mxu0 }
  0xdf   : > { %v3843_v25 = vadd.f32 %v869_v18, %v821_v32  ;;  %2871 = vmatmul.msk.f32.gmra.mxu2 %vm387_vm2, %v3494_v34  ;;  %2888 = vmatmul.msk.f32.gmra.mxu3 %vm387_vm2, %v3550_v57 }
  0xe1   : > { %2905 = vmatmul.msk.f32.gmra.mxu0 %vm387_vm2, %v3659_v17 }
  0xe2   : > { %v688_v33 = vpop.f32.mrf.mxu2  ;;  %v778_v22 = vpop.f32.mrf.mxu3 }
  0xe3   : > { %v732_v21 = vadd.f32 %v688_v33, %v548_v6  ;;  %v550_v31 = vpop.f32.mrf.mxu1 }
  0xe4   : > { %v551_v34 = vadd.f32 %v550_v31, %v450_v0 }
  0xe5   : > { %v822_v50 = vadd.f32 %v778_v22, %v732_v21 }
  0xe6   : > { %2855 = vmatmul.msk.f32.gmra.mxu1 %vm387_vm2, %v3646_v44  ;;  %v875_v36 = vpop.f32.mrf.mxu0 }
  0xe7   : > { %v3853_v55 = vadd.f32 %v872_v28, %v822_v50  ;;  %2872 = vmatmul.msk.f32.gmra.mxu2 %vm387_vm2, %v3497_v35  ;;  %2889 = vmatmul.msk.f32.gmra.mxu3 %vm387_vm2, %v3580_v8 }
  0xe9   : > { %2906 = vmatmul.msk.f32.gmra.mxu0 %vm387_vm2, %v3671_v48 }
  0xea   : > { %v691_v57 = vpop.f32.mrf.mxu2  ;;  %v781_v46 = vpop.f32.mrf.mxu3 }
  0xeb   : > { %v733_v18 = vadd.f32 %v691_v57, %v551_v34  ;;  %v553_v5 = vpop.f32.mrf.mxu1 }
  0xec   : > { %v554_v35 = vadd.f32 %v553_v5, %v3733_v61 }
  0xed   : > { %v823_v19 = vadd.f32 %v781_v46, %v733_v18 }
  0xee   : > { %2856 = vmatmul.msk.f32.gmra.mxu1 %vm387_vm2, %v3659_v17  ;;  %v878_v44 = vpop.f32.mrf.mxu0 }
  0xef   : > { %v3863_v2 = vadd.f32 %v875_v36, %v823_v19  ;;  %2873 = vmatmul.msk.f32.gmra.mxu2 %vm387_vm2, %v3432_v7  ;;  %2890 = vmatmul.msk.f32.gmra.mxu3 %vm387_vm2, %v3468_v23 }
  0xf1   : > { %2907 = vmatmul.msk.f32.gmra.mxu0 %vm387_vm2, %v3684_v51 }
  0xf2   : > { %v694_v8 = vpop.f32.mrf.mxu2  ;;  %v784_v0 = vpop.f32.mrf.mxu3 }
  0xf3   : > { %v734_v27 = vadd.f32 %v694_v8, %v554_v35  ;;  %v556_v54 = vpop.f32.mrf.mxu1 }
  0xf4   : > { %v557_v7 = vadd.f32 %v556_v54, %v3751_v15 }
  0xf5   : > { %v824_v32 = vadd.f32 %v784_v0, %v734_v27 }
  0xf6   : > { %2857 = vmatmul.msk.f32.gmra.mxu1 %vm387_vm2, %v3671_v48  ;;  %v881_v17 = vpop.f32.mrf.mxu0 }
  0xf7   : > { %v3874_v28 = vadd.f32 %v878_v44, %v824_v32  ;;  %2874 = vmatmul.msk.f32.gmra.mxu2 %vm387_vm2, %v3437_v10  ;;  %2891 = vmatmul.msk.f32.gmra.mxu3 %vm387_vm2, %v3503_v37 }
  0xf9   : > { %2908 = vmatmul.msk.f32.gmra.mxu0 %vm387_vm2, %v3696_v53 }
  0xfa   : > { %v697_v23 = vpop.f32.mrf.mxu2  ;;  %v787_v61 = vpop.f32.mrf.mxu3 }
  0xfb   : > { %v735_v6 = vadd.f32 %v697_v23, %v557_v7  ;;  %v559_v33 = vpop.f32.mrf.mxu1 }
  0xfc   : > { %v560_v10 = vadd.f32 %v559_v33, %v3778_v41 }
  0xfd   : > { %v825_v22 = vadd.f32 %v787_v61, %v735_v6 }
  0xfe   : > { %2858 = vmatmul.msk.f32.gmra.mxu1 %vm387_vm2, %v3684_v51  ;;  %v884_v48 = vpop.f32.mrf.mxu0 }
  0xff   : > { %v3885_v21 = vadd.f32 %v881_v17, %v825_v22  ;;  %2875 = vmatmul.msk.f32.gmra.mxu2 %vm387_vm2, %v3509_v39  ;;  %2892 = vmatmul.msk.f32.gmra.mxu3 %vm387_vm2, %v3553_v58 }
 0x101   : > { %2909 = vmatmul.msk.f32.gmra.mxu0 %vm387_vm2, %v3709_v20 }
 0x102   : > { %v700_v37 = vpop.f32.mrf.mxu2  ;;  %v790_v15 = vpop.f32.mrf.mxu3 }
 0x103   : > { %v736_v31 = vadd.f32 %v700_v37, %v560_v10  ;;  %v562_v50 = vpop.f32.mrf.mxu1 }
 0x104   : > { %v563_v39 = vadd.f32 %v562_v50, %v3803_v56 }
 0x105   : > { %v826_v36 = vadd.f32 %v790_v15, %v736_v31  ;;  %v933_v31 = vrot.slane %v3793_v49, 2 }
 0x106   : > { %2859 = vmatmul.msk.f32.gmra.mxu1 %vm387_vm2, %v3696_v53  ;;  %v887_v51 = vpop.f32.mrf.mxu0 }
 0x107   : > { %v3896_v34 = vadd.f32 %v884_v48, %v826_v36  ;;  %2876 = vmatmul.msk.f32.gmra.mxu2 %vm387_vm2, %v3512_v40  ;;  %2893 = vmatmul.msk.f32.gmra.mxu3 %vm387_vm2, %v3583_v9 }
 0x109   : > { %2910 = vmatmul.msk.f32.gmra.mxu0 %vm387_vm2, %v3721_v60 }
 0x10a   : > { %v703_v58 = vpop.f32.mrf.mxu2  ;;  %v793_v41 = vpop.f32.mrf.mxu3 }
 0x10b   : > { %v737_v57 = vadd.f32 %v703_v58, %v563_v39  ;;  %v565_v46 = vpop.f32.mrf.mxu1  ;;  %v311_v39 = vld [vmem:[%s3423_s9 + $0xe0] sm:$0xff] }
 0x10c   : > { %v566_v40 = vadd.f32 %v565_v46, %v3747_v4 }
 0x10d   : > { %v827_v18 = vadd.f32 %v793_v41, %v737_v57  ;;  %v1115_v41 = vrot.slane %v311_v39, 1  ;;  %v4693_v57 = vld [vmem:[#allocation13_spill] sm:$0xff] }
 0x10e   : > { %2860 = vmatmul.msk.f32.gmra.mxu1 %vm387_vm2, %v3709_v20  ;;  %v890_v53 = vpop.f32.mrf.mxu0 }
 0x10f   : > { %v3907_v5 = vadd.f32 %v887_v51, %v827_v18  ;;  %2877 = vmatmul.msk.f32.gmra.mxu2 %vm387_vm2, %v3441_v12  ;;  %2894 = vmatmul.msk.f32.gmra.mxu3 %vm387_vm2, %v3471_v24  ;;  %v310_v51 = vld [vmem:[%s3423_s9 + $0xd8] sm:$0xff] }
 0x110   : > { %v1114_v49 = vrot.slane %v310_v51, 1 }
 0x111   : > { %2911 = vmatmul.msk.f32.gmra.mxu0 %vm387_vm2, %v3736_v1 }
 0x112   : > { %v706_v9 = vpop.f32.mrf.mxu2  ;;  %v796_v56 = vpop.f32.mrf.mxu3 }
 0x113   : > { %v738_v19 = vadd.f32 %v706_v9, %v566_v40  ;;  %v568_v44 = vpop.f32.mrf.mxu1  ;;  %v1208_v40 = vrot.slane %v311_v39, 2 }
 0x114   : > { %v569_v12 = vadd.f32 %v568_v44, %v3772_v30 }
 0x115   : > { %v828_v35 = vadd.f32 %v796_v56, %v738_v19  ;;  %v1116_v19 = vsel %vm346_vm1, %v1114_v49, %v1115_v41 }
 0x116   : > { %2861 = vmatmul.msk.f32.gmra.mxu1 %vm387_vm2, %v3721_v60  ;;  %v893_v20 = vpop.f32.mrf.mxu0 }
 0x117   : > { %v3918_v8 = vadd.f32 %v890_v53, %v828_v35  ;;  %2878 = vmatmul.msk.f32.gmra.mxu2 %vm387_vm2, %v3444_v13  ;;  %2895 = vmatmul.msk.f32.gmra.mxu3 %vm387_vm2, %v3506_v38  ;;  %v1207_v53 = vrot.slane %v310_v51, 2  ;;  %v312_v35 = vld [vmem:[%s3423_s9 + $0xe8] sm:$0x3]  ;;  %s4677_s9 = scalar_lea.vmem [#allocation6], %s4464_s8 }
 0x119   : > { %2912 = vmatmul.msk.f32.gmra.mxu0 %vm387_vm2, %v3754_v16 }
 0x11a   : > { %v709_v24 = vpop.f32.mrf.mxu2  ;;  %v799_v4 = vpop.f32.mrf.mxu3 }
 0x11b   : > { %v739_v0 = vadd.f32 %v709_v24, %v569_v12  ;;  %v571_v27 = vpop.f32.mrf.mxu1  ;;  %v1117_v24 = vrot.slane %v312_v35, 1 }
 0x11c   : > { %v572_v13 = vadd.f32 %v571_v27, %v3798_v52  ;;  %v931_v52 = vrot.slane %v3763_v26, 2 }
 0x11d   : > { %v829_v54 = vadd.f32 %v799_v4, %v739_v0  ;;  %v4694_v4 = vld [vmem:[#allocation14_spill] sm:$0xff] }
 0x11e   : > { %2862 = vmatmul.msk.f32.gmra.mxu1 %vm387_vm2, %v3736_v1  ;;  %v896_v60 = vpop.f32.mrf.mxu0  ;;  %v934_v58 = vsel %vm589_vm3, %v931_v52, %v933_v31 }
 0x11f   : > { %v3929_v32 = vadd.f32 %v893_v20, %v829_v54  ;;  %2879 = vmatmul.msk.f32.gmra.mxu2 %vm387_vm2, %v3519_v42  ;;  %2896 = vmatmul.msk.f32.gmra.mxu3 %vm387_vm2, %v3556_v59  ;;  %v930_v59 = vrot.slane %v3768_v29, 2  ;;  %v1209_v20 = vsel %vm589_vm3, %v1207_v53, %v1208_v40 }
 0x121   : > { %2913 = vmatmul.msk.f32.gmra.mxu0 %vm387_vm2, %v3781_v45 }
 0x122   : > { %v712_v38 = vpop.f32.mrf.mxu2  ;;  %v802_v30 = vpop.f32.mrf.mxu3 }
 0x123   : > { %v740_v17 = vadd.f32 %v712_v38, %v572_v13  ;;  %v574_v7 = vpop.f32.mrf.mxu1 }
 0x124   : > { %v575_v42 = vadd.f32 %v574_v7, %v3819_v3 }
 0x125   : > { %v830_v23 = vadd.f32 %v802_v30, %v740_v17  ;;  %v1118_v30 = vsel %vm346_vm1, %v1115_v41, %v1117_v24 }
 0x126   : > { %2863 = vmatmul.msk.f32.gmra.mxu1 %vm387_vm2, %v3754_v16  ;;  %v899_v1 = vpop.f32.mrf.mxu0 }
 0x127   : > { %v3940_v61 = vadd.f32 %v896_v60, %v830_v23  ;;  %2880 = vmatmul.msk.f32.gmra.mxu2 %vm387_vm2, %v3522_v43  ;;  %2897 = vmatmul.msk.f32.gmra.mxu3 %vm387_vm2, %v3586_v11  ;;  %v932_v11 = vsel %vm589_vm3, %v930_v59, %v931_v52  ;;  %v1210_v60 = vrot.slane %v312_v35, 2 }
 0x129   : > { %2914 = vmatmul.msk.f32.gmra.mxu0 %vm387_vm2, %v3806_v63  ;;  %v1211_v23 = vsel %vm589_vm3, %v1208_v40, %v1210_v60 }
 0x12a   : > { %v715_v6 = vpop.f32.mrf.mxu2  ;;  %v805_v16 = vpop.f32.mrf.mxu3 }
 0x12b   : > { %v741_v33 = vadd.f32 %v715_v6, %v575_v42  ;;  %v577_v22 = vpop.f32.mrf.mxu1  ;;  %v4695_v42 = vld [vmem:[#allocation16_spill] sm:$0xff] }
 0x12c   : > { %v578_v10 = vadd.f32 %v577_v22, %v3749_v14  ;;  %v4692_v14 = vld [vmem:[#allocation15_spill] sm:$0xff] }
 0x12d   : > { %v831_v48 = vadd.f32 %v805_v16, %v741_v33 }
 0x12e   : > { %2864 = vmatmul.msk.f32.gmra.mxu1 %vm387_vm2, %v3781_v45  ;;  %v902_v43 = vpop.f32.mrf.mxu0 }
 0x12f   : > { %v3954_v3 = vadd.f32 %v899_v1, %v831_v48  ;;  %2881 = vmatmul.msk.f32.gmra.mxu2 %vm387_vm2, %v3768_v29  ;;  %2898 = vmatmul.msk.f32.gmra.mxu3 %vm387_vm2, %v3786_v47 }
 0x131   : > { %2915 = vmatmul.msk.f32.gmra.mxu0 %vm387_vm2, %v932_v11 }
 0x132   : > { %v718_v37 = vpop.f32.mrf.mxu2  ;;  %v808_v15 = vpop.f32.mrf.mxu3 }
 0x133   : > { %v742_v45 = vadd.f32 %v718_v37, %v578_v10  ;;  %v580_v50 = vpop.f32.mrf.mxu1 }
 0x134   : > { %v581_v46 = vadd.f32 %v580_v50, %v4693_v57 }
 0x135   : > { %v832_v36 = vadd.f32 %v808_v15, %v742_v45 }
 0x136   : > { %2865 = vmatmul.msk.f32.gmra.mxu1 %vm387_vm2, %v3806_v63  ;;  %v905_v29 = vpop.f32.mrf.mxu0 }
 0x137   : > { %v3968_v47 = vadd.f32 %v902_v43, %v832_v36  ;;  %2882 = vmatmul.msk.f32.gmra.mxu2 %vm387_vm2, %v3763_v26  ;;  %2899 = vmatmul.msk.f32.gmra.mxu3 %vm387_vm2, %v4692_v14 }
 0x139   : > { %2916 = vmatmul.msk.f32.gmra.mxu0 %vm387_vm2, %v934_v58 }
 0x13a   : > { %v721_v18 = vpop.f32.mrf.mxu2  ;;  %v811_v63 = vpop.f32.mrf.mxu3 }
 0x13b   : > { %v743_v9 = vadd.f32 %v721_v18, %v581_v46  ;;  %v583_v56 = vpop.f32.mrf.mxu1 }
 0x13c   : > { %v584_v0 = vadd.f32 %v583_v56, %v4694_v4 }
 0x13d   : > { %v833_v44 = vadd.f32 %v811_v63, %v743_v9 }
 0x13e   : > { %2866 = vmatmul.msk.f32.gmra.mxu1 %vm387_vm2, %v932_v11  ;;  %v908_v26 = vpop.f32.mrf.mxu0 }
 0x13f   : > { %v3980_v12 = vadd.f32 %v905_v29, %v833_v44  ;;  %2883 = vmatmul.msk.f32.gmra.mxu2 %vm387_vm2, %v310_v51  ;;  %2900 = vmatmul.msk.f32.gmra.mxu3 %vm387_vm2, %v1116_v19 }
 0x141   : > { %2917 = vmatmul.msk.f32.gmra.mxu0 %vm387_vm2, %v1209_v20 }
 0x142   : > { %v724_v27 = vpop.f32.mrf.mxu2  ;;  %v814_v54 = vpop.f32.mrf.mxu3 }
 0x143   : > { %v744_v13 = vadd.f32 %v724_v27, %v584_v0  ;;  %v586_v38 = vpop.f32.mrf.mxu1 }
 0x144   : > { %v587_v59 = vadd.f32 %v586_v38, %v4695_v42 }
 0x145   : > { %v834_v17 = vadd.f32 %v814_v54, %v744_v13 }
 0x146   : > { %2867 = vmatmul.msk.f32.gmra.mxu1 %vm387_vm2, %v934_v58  ;;  %v911_v7 = vpop.f32.mrf.mxu0 }
 0x147   : > { %v3989_v1 = vadd.f32 %v908_v26, %v834_v17  ;;  %2884 = vmatmul.msk.f32.gmra.mxu2 %vm387_vm2, %v311_v39  ;;  %2901 = vmatmul.msk.f32.gmra.mxu3 %vm387_vm2, %v1118_v30 }
 0x149   : > { %2918 = vmatmul.msk.f32.gmra.mxu0 %vm387_vm2, %v1211_v23 }
 0x14a   : > { %v727_v52 = vpop.f32.mrf.mxu2  ;;  %v817_v6 = vpop.f32.mrf.mxu3 }
 0x14b   : > { %v745_v16 = vadd.f32 %v727_v52, %v587_v59  ;;  %v959_v33 = vpop.f32.mrf.mxu1 }
 0x14c   : > { %v1007_v11 = vadd.f32 %v959_v33, %v3833_v62 }
 0x14d   : > { %v835_v22 = vadd.f32 %v817_v6, %v745_v16 }
 0x14e   : > { %v1236_v48 = vpop.f32.mrf.mxu0 }
 0x14f   : > { %v3995_v43 = vadd.f32 %v911_v7, %v835_v22 }
 0x152   : > { %v1049_v10 = vpop.f32.mrf.mxu2  ;;  %v1143_v37 = vpop.f32.mrf.mxu3 }
 0x153   : > { %v1097_v15 = vadd.f32 %v1049_v10, %v1007_v11  ;;  %v962_v31 = vpop.f32.mrf.mxu1 }
 0x154   : > { %v1008_v45 = vadd.f32 %v962_v31, %v3843_v25 }
 0x155   : > { %v1191_v36 = vadd.f32 %v1143_v37, %v1097_v15 }
 0x156   : > { %v1239_v50 = vpop.f32.mrf.mxu0 }
 0x157   : > { %v1284_v29 = vadd.f32 %v1236_v48, %v1191_v36 }
 0x159   : > { %v1340_v57 = vmul.f32 %v1284_v29, %v1284_v29  ;;  %v1301_v62 = vsel %vm1300_vm4, %v1284_v29, 0.0  ;;  %v1410_v0 = vrot.slane %v1284_v29, 2  ;;  %v1411_v27 = vrot.slane %v1284_v29, 4 }
 0x15a   : > { %v1052_v51 = vpop.f32.mrf.mxu2  ;;  %v1146_v39 = vpop.f32.mrf.mxu3  ;;  %v1412_v54 = vrot.slane %v1284_v29, 6 }
 0x15b   : > { %v1098_v58 = vadd.f32 %v1052_v51, %v1008_v45  ;;  %v965_v14 = vpop.f32.mrf.mxu1  ;;  %v1356_v56 = vsel %vm1300_vm4, %v1340_v57, 0.0 }
 0x15c   : > { %v1009_v18 = vadd.f32 %v965_v14, %v3853_v55 }
 0x15d   : > { %v1192_v49 = vadd.f32 %v1146_v39, %v1098_v58 }
 0x15e   : > { %v1242_v41 = vpop.f32.mrf.mxu0 }
 0x15f   : > { %v3999_v46 = vadd.f32 %v1239_v50, %v1192_v49 }
 0x161   : > { %v1302_v25 = vsel %vm1300_vm4, %v3999_v46, 0.0  ;;  %v1341_v63 = vmul.f32 %v3999_v46, %v3999_v46 }
 0x162   : > { %v1303_v53 = vadd.f32 %v1302_v25, %v1301_v62  ;;  %v1055_v40 = vpop.f32.mrf.mxu2  ;;  %v1149_v9 = vpop.f32.mrf.mxu3 }
 0x163   : > { %v1357_v19 = vsel %vm1300_vm4, %v1341_v63, 0.0  ;;  %v1099_v44 = vadd.f32 %v1055_v40, %v1009_v18  ;;  %v968_v35 = vpop.f32.mrf.mxu1 }
 0x164   : > { %v1358_v26 = vadd.f32 %v1357_v19, %v1356_v56  ;;  %v1010_v20 = vadd.f32 %v968_v35, %v3863_v2 }
 0x165   : > { %v1193_v24 = vadd.f32 %v1149_v9, %v1099_v44 }
 0x166   : > { %v4010_v4 = vpop.f32.mrf.mxu0 }
 0x167   : > { %v1286_v55 = vadd.f32 %v1242_v41, %v1193_v24  ;;  %v1413_v24 = vrot.slane %v3999_v46, 2 }
 0x169   : > { %v1304_v60 = vsel %vm1300_vm4, %v1286_v55, 0.0  ;;  %v1342_v13 = vmul.f32 %v1286_v55, %v1286_v55  ;;  %v1416_v38 = vrot.slane %v1286_v55, 2  ;;  %v1417_v30 = vrot.slane %v1286_v55, 4 }
 0x16a   : > { %v4013_v17 = vadd.f32 %v1304_v60, %v1303_v53  ;;  %v1418_v7 = vrot.slane %v1286_v55, 6  ;;  %v1506_v23 = vmax.f32 %v1284_v29, %v1286_v55  ;;  %v1538_v42 = vmin.f32 %v1284_v29, %v1286_v55  ;;  %v1058_v2 = vpop.f32.mrf.mxu2  ;;  %v1152_v59 = vpop.f32.mrf.mxu3 }
 0x16b   : > { %v1359_v52 = vsel %vm1300_vm4, %v1342_v13, 0.0  ;;  %v1507_v6 = vmax.f32 %v1410_v0, %v1416_v38  ;;  %v1508_v16 = vmax.f32 %v1411_v27, %v1417_v30  ;;  %v1539_v33 = vmin.f32 %v1410_v0, %v1416_v38  ;;  %v971_v22 = vpop.f32.mrf.mxu1 }
 0x16c   : > { %v4016_v48 = vadd.f32 %v1359_v52, %v1358_v26  ;;  %v1509_v11 = vmax.f32 %v1412_v54, %v1418_v7  ;;  %v1540_v10 = vmin.f32 %v1411_v27, %v1417_v30  ;;  %v1541_v37 = vmin.f32 %v1412_v54, %v1418_v7 }
 0x16d   : > { %v2919_v15 = vrot.slane %v1506_v23, 9  ;;  %v2920_v31 = vrot.slane %v1507_v6, 9  ;;  %v2921_v45 = vrot.slane %v1508_v16, 9  ;;  %v2951_v50 = vrot.slane %v1538_v42, 9 }
 0x16e   : > { %v2922_v36 = vrot.slane %v1509_v11, 9  ;;  %v2952_v51 = vrot.slane %v1539_v33, 9  ;;  %v2953_v39 = vrot.slane %v1540_v10, 9  ;;  %v2954_v29 = vrot.slane %v1541_v37, 9  ;;  %v4019_v40 = vpop.f32.mrf.mxu0 }
 0x16f   : > { %v1698_v58 = vmax.f32 %v1506_v23, %v2919_v15  ;;  %v1699_v14 = vmax.f32 %v1507_v6, %v2920_v31  ;;  %v1700_v49 = vmax.f32 %v1508_v16, %v2921_v45  ;;  %v1858_v18 = vmin.f32 %v1538_v42, %v2951_v50 }
 0x170   : > { %v1701_v41 = vmax.f32 %v1509_v11, %v2922_v36  ;;  %v1859_v57 = vmin.f32 %v1539_v33, %v2952_v51  ;;  %v1861_v62 = vmin.f32 %v1541_v37, %v2954_v29  ;;  %v1100_v63 = vadd.f32 %v1058_v2, %v1010_v20 }
 0x171   : > { %v1926_v25 = vrot.slane %v1699_v14, 7  ;;  %v1011_v53 = vadd.f32 %v971_v22, %v3874_v28  ;;  %v1860_v9 = vmin.f32 %v1540_v10, %v2953_v39  ;;  %v1414_v11 = vrot.slane %v3999_v46, 4 }
 0x172   : > { %v1937_v56 = vrot.slane %v1701_v41, 7  ;;  %v2240_v19 = vrot.slane %v1859_v57, 7  ;;  %v2247_v44 = vrot.slane %v1861_v62, 7  ;;  %v1061_v35 = vpop.f32.mrf.mxu2  ;;  %v1155_v26 = vpop.f32.mrf.mxu3  ;;  %v1194_v0 = vadd.f32 %v1152_v59, %v1100_v63 }
 0x173   : > { %v1928_v55 = vsel %vm1927_vm5, %v1926_v25, %v1698_v58  ;;  %v1101_v27 = vadd.f32 %v1061_v35, %v1011_v53  ;;  %v974_v54 = vpop.f32.mrf.mxu1  ;;  %v1415_v10 = vrot.slane %v3999_v46, 6 }
 0x174   : > { %v1930_v60 = vsel %vm1929_vm6, %v1926_v25, %v1928_v55  ;;  %v1938_v20 = vsel %vm1927_vm5, %v1937_v56, %v1700_v49  ;;  %v2241_v28 = vsel %vm1927_vm5, %v2240_v19, %v1858_v18  ;;  %v2248_v13 = vsel %vm1927_vm5, %v2247_v44, %v1860_v9 }
 0x175   : > { %v1932_v38 = vsel %vm1931_vm7, %v1926_v25, %v1930_v60  ;;  %v1939_v30 = vsel %vm1929_vm6, %v1937_v56, %v1938_v20  ;;  %v2242_v7 = vsel %vm1929_vm6, %v2240_v19, %v2241_v28  ;;  %v2249_v23 = vsel %vm1929_vm6, %v2247_v44, %v2248_v13 }
 0x176   : > { %v4032_v42 = vsel %vm1933_vm8, %v1926_v25, %v1932_v38  ;;  %v1940_v2 = vsel %vm1931_vm7, %v1937_v56, %v1939_v30  ;;  %v2243_v59 = vsel %vm1931_vm7, %v2240_v19, %v2242_v7  ;;  %v2250_v52 = vsel %vm1931_vm7, %v2247_v44, %v2249_v23  ;;  %v1251_v18 = vpop.f32.mrf.mxu0 }
 0x177   : > { %v4038_v6 = vsel %vm1933_vm8, %v1937_v56, %v1940_v2  ;;  %v4041_v16 = vsel %vm1933_vm8, %v2240_v19, %v2243_v59  ;;  %v4044_v33 = vsel %vm1933_vm8, %v2247_v44, %v2250_v52  ;;  %v1287_v22 = vadd.f32 %v4010_v4, %v1194_v0 }
 0x178   : > { %v1012_v37 = vadd.f32 %v974_v54, %v3885_v21  ;;  %v1195_v15 = vadd.f32 %v1155_v26, %v1101_v27 }
 0x179   : > { %v1306_v31 = vsel %vm1300_vm4, %v1287_v22, 0.0  ;;  %v1343_v45 = vmul.f32 %v1287_v22, %v1287_v22  ;;  %v1419_v50 = vrot.slane %v1287_v22, 2  ;;  %v1420_v36 = vrot.slane %v1287_v22, 4 }
 0x17a   : > { %v1307_v51 = vadd.f32 %v1306_v31, %v4013_v17  ;;  %v1421_v39 = vrot.slane %v1287_v22, 6  ;;  %v1510_v29 = vmax.f32 %v3999_v46, %v1287_v22  ;;  %v1542_v58 = vmin.f32 %v3999_v46, %v1287_v22  ;;  %v1064_v4 = vpop.f32.mrf.mxu2  ;;  %v1158_v14 = vpop.f32.mrf.mxu3 }
 0x17b   : > { %v1361_v49 = vsel %vm1300_vm4, %v1343_v45, 0.0  ;;  %v1511_v41 = vmax.f32 %v1413_v24, %v1419_v50  ;;  %v1512_v57 = vmax.f32 %v1414_v11, %v1420_v36  ;;  %v1543_v21 = vmin.f32 %v1413_v24, %v1419_v50  ;;  %v977_v62 = vpop.f32.mrf.mxu1 }
 0x17c   : > { %v1362_v25 = vadd.f32 %v1361_v49, %v4016_v48  ;;  %v1513_v63 = vmax.f32 %v1415_v10, %v1421_v39  ;;  %v1544_v53 = vmin.f32 %v1414_v11, %v1420_v36  ;;  %v1545_v9 = vmin.f32 %v1415_v10, %v1421_v39 }
 0x17d   : > { %v2923_v17 = vrot.slane %v1510_v29, 9  ;;  %v2924_v56 = vrot.slane %v1511_v41, 9  ;;  %v2925_v19 = vrot.slane %v1512_v57, 9  ;;  %v2955_v44 = vrot.slane %v1542_v58, 9 }
 0x17e   : > { %v2926_v35 = vrot.slane %v1513_v63, 9  ;;  %v2956_v46 = vrot.slane %v1543_v21, 9  ;;  %v2957_v26 = vrot.slane %v1544_v53, 9  ;;  %v2958_v55 = vrot.slane %v1545_v9, 9 }
 0x17f   : > { %v1702_v0 = vmax.f32 %v1510_v29, %v2923_v17  ;;  %v1703_v27 = vmax.f32 %v1511_v41, %v2924_v56  ;;  %v1704_v54 = vmax.f32 %v1512_v57, %v2925_v19  ;;  %v1862_v28 = vmin.f32 %v1542_v58, %v2955_v44 }
 0x180   : > { %v1705_v60 = vmax.f32 %v1513_v63, %v2926_v35  ;;  %v1863_v24 = vmin.f32 %v1543_v21, %v2956_v46  ;;  %v1865_v20 = vmin.f32 %v1545_v9, %v2958_v55  ;;  %v4057_v48 = vadd.f32 %v4019_v40, %v1195_v15 }
 0x181   : > { %v1944_v13 = vrot.slane %v1703_v27, 7  ;;  %v1102_v38 = vadd.f32 %v1064_v4, %v1012_v37  ;;  %v1864_v30 = vmin.f32 %v1544_v53, %v2957_v26  ;;  %v1013_v31 = vadd.f32 %v977_v62, %v3896_v34  ;;  %v1254_v4 = vpop.f32.mrf.mxu0 }
 0x182   : > { %v1951_v7 = vrot.slane %v1705_v60, 7  ;;  %v2254_v23 = vrot.slane %v1863_v24, 7  ;;  %v2261_v2 = vrot.slane %v1865_v20, 7  ;;  %v1067_v59 = vpop.f32.mrf.mxu2  ;;  %v1161_v52 = vpop.f32.mrf.mxu3  ;;  %v1308_v11 = vsel %vm1300_vm4, %v4057_v48, 0.0 }
 0x183   : > { %v1945_v22 = vsel %vm1927_vm5, %v1944_v13, %v1702_v0  ;;  %v1344_v10 = vmul.f32 %v4057_v48, %v4057_v48  ;;  %v980_v45 = vpop.f32.mrf.mxu1  ;;  %v1309_v53 = vadd.f32 %v1308_v11, %v1307_v51  ;;  %v1196_v17 = vadd.f32 %v1158_v14, %v1102_v38 }
 0x184   : > { %v1946_v40 = vsel %vm1929_vm6, %v1944_v13, %v1945_v22  ;;  %v1952_v37 = vsel %vm1927_vm5, %v1951_v7, %v1704_v54  ;;  %v2255_v15 = vsel %vm1927_vm5, %v2254_v23, %v1862_v28  ;;  %v2262_v50 = vsel %vm1927_vm5, %v2261_v2, %v1864_v30 }
 0x185   : > { %v1947_v36 = vsel %vm1931_vm7, %v1944_v13, %v1946_v40  ;;  %v1953_v39 = vsel %vm1929_vm6, %v1951_v7, %v1952_v37  ;;  %v2256_v29 = vsel %vm1929_vm6, %v2254_v23, %v2255_v15  ;;  %v2263_v58 = vsel %vm1929_vm6, %v2261_v2, %v2262_v50 }
 0x186   : > { %v4074_v34 = vsel %vm1933_vm8, %v1944_v13, %v1947_v36  ;;  %v1954_v49 = vsel %vm1931_vm7, %v1951_v7, %v1953_v39  ;;  %v2257_v41 = vsel %vm1931_vm7, %v2254_v23, %v2256_v29  ;;  %v2264_v57 = vsel %vm1931_vm7, %v2261_v2, %v2263_v58 }
 0x187   : > { %v4080_v21 = vsel %vm1933_vm8, %v1951_v7, %v1954_v49  ;;  %v4083_v62 = vsel %vm1933_vm8, %v2254_v23, %v2257_v41  ;;  %v4086_v63 = vsel %vm1933_vm8, %v2261_v2, %v2264_v57  ;;  %v1363_v9 = vsel %vm1300_vm4, %v1344_v10, 0.0 }
 0x188   : > { %v1364_v56 = vadd.f32 %v1363_v9, %v1362_v25  ;;  %v1103_v19 = vadd.f32 %v1067_v59, %v1013_v31  ;;  %v1014_v44 = vadd.f32 %v980_v45, %v3907_v5  ;;  %v4090_v35 = vadd.f32 %v1251_v18, %v1196_v17 }
 0x189   : > { %v1422_v14 = vrot.slane %v4057_v48, 2  ;;  %v1423_v25 = vrot.slane %v4057_v48, 4  ;;  %v1424_v18 = vrot.slane %v4057_v48, 6  ;;  %v3280_v20 = vmov 1934713408   ;;  %v1257_v2 = vpop.f32.mrf.mxu0 }
 0x18a   : > { %v1070_v46 = vpop.f32.mrf.mxu2  ;;  %v1164_v26 = vpop.f32.mrf.mxu3  ;;  %v1197_v55 = vadd.f32 %v1161_v52, %v1103_v19  ;;  %v1310_v27 = vsel %vm1300_vm4, %v4090_v35, 0.0  ;;  %v1345_v54 = vmul.f32 %v4090_v35, %v4090_v35  ;;  %v2060_v28 = vunpack.c.l.s4 %v3280_v20 }
 0x18b   : > { %v1104_v0 = vadd.f32 %v1070_v46, %v1014_v44  ;;  %v4096_v51 = vpop.f32.mrf.mxu1  ;;  %v1311_v60 = vadd.f32 %v1310_v27, %v1309_v53 }
 0x18c   : > { %v1290_v5 = vadd.f32 %v1254_v4, %v1197_v55  ;;  %v1365_v24 = vsel %vm1300_vm4, %v1345_v54, 0.0  ;;  %v4111_v55 = vunpack.c.0.s8 %v2060_v28 }
 0x18d   : > { %v1198_v13 = vadd.f32 %v1164_v26, %v1104_v0  ;;  %v1366_v38 = vadd.f32 %v1365_v24, %v1364_v56  ;;  %v1425_v56 = vrot.slane %v4090_v35, 2 }
 0x18e   : > { %v1312_v30 = vsel %vm1300_vm4, %v1290_v5, 0.0  ;;  %v1346_v7 = vmul.f32 %v1290_v5, %v1290_v5  ;;  %v1428_v23 = vrot.slane %v1290_v5, 2  ;;  %v1429_v52 = vrot.slane %v1290_v5, 4 }
 0x18f   : > { %v1313_v59 = vadd.f32 %v1312_v30, %v1311_v60  ;;  %v1430_v22 = vrot.slane %v1290_v5, 6  ;;  %v1514_v11 = vmax.f32 %v4057_v48, %v1290_v5  ;;  %v1546_v45 = vmin.f32 %v4057_v48, %v1290_v5 }
 0x190   : > { %v1367_v10 = vsel %vm1300_vm4, %v1346_v7, 0.0  ;;  %v1515_v31 = vmax.f32 %v1422_v14, %v1428_v23  ;;  %v1547_v40 = vmin.f32 %v1422_v14, %v1428_v23  ;;  %v1516_v15 = vmax.f32 %v1423_v25, %v1429_v52 }
 0x191   : > { %v1368_v37 = vadd.f32 %v1367_v10, %v1366_v38  ;;  %v1517_v50 = vmax.f32 %v1424_v18, %v1430_v22  ;;  %v1548_v36 = vmin.f32 %v1423_v25, %v1429_v52  ;;  %v1549_v29 = vmin.f32 %v1424_v18, %v1430_v22  ;;  %v4117_v23 = vpop.f32.mrf.mxu0 }
 0x192   : > { %v4106_v39 = vpop.f32.mrf.mxu2  ;;  %v2927_v58 = vrot.slane %v1514_v11, 9  ;;  %v2928_v4 = vrot.slane %v1515_v31, 9  ;;  %v2959_v49 = vrot.slane %v1546_v45, 9  ;;  %v4108_v41 = vpop.f32.mrf.mxu3  ;;  %v2929_v57 = vrot.slane %v1516_v15, 9 }
 0x193   : > { %v2930_v53 = vrot.slane %v1517_v50, 9  ;;  %v2960_v9 = vrot.slane %v1547_v40, 9  ;;  %v2961_v17 = vrot.slane %v1548_v36, 9  ;;  %v2962_v19 = vrot.slane %v1549_v29, 9  ;;  %v4113_v0 = vpop.f32.mrf.mxu1 }
 0x194   : > { %v1707_v48 = vmax.f32 %v1515_v31, %v2928_v4  ;;  %v1706_v44 = vmax.f32 %v1514_v11, %v2927_v58  ;;  %v1866_v27 = vmin.f32 %v1546_v45, %v2959_v49  ;;  %v1291_v25 = vadd.f32 %v1257_v2, %v1198_v13 }
 0x195   : > { %v1709_v46 = vmax.f32 %v1517_v50, %v2930_v53  ;;  %v1867_v26 = vmin.f32 %v1547_v40, %v2960_v9  ;;  %v1869_v54 = vmin.f32 %v1549_v29, %v2962_v19  ;;  %v1708_v60 = vmax.f32 %v1516_v15, %v2929_v57 }
 0x196   : > { %v1958_v14 = vrot.slane %v1707_v48, 7  ;;  %v1868_v5 = vmin.f32 %v1548_v36, %v2961_v17  ;;  %v1314_v30 = vsel %vm1300_vm4, %v1291_v25, 0.0  ;;  %v1347_v7 = vmul.f32 %v1291_v25, %v1291_v25 }
 0x197   : > { %v1965_v18 = vrot.slane %v1709_v46, 7  ;;  %v2268_v24 = vrot.slane %v1867_v26, 7  ;;  %v2275_v38 = vrot.slane %v1869_v54, 7  ;;  %v4122_v11 = vadd.f32 %v1314_v30, %v1313_v59 }
 0x198   : > { %v1959_v20 = vsel %vm1927_vm5, %v1958_v14, %v1706_v44  ;;  %v1369_v17 = vsel %vm1300_vm4, %v1347_v7, 0.0  ;;  %v1431_v46 = vrot.slane %v1291_v25, 2  ;;  %v1015_v30 = vadd.f32 %v4096_v51, %v3918_v8 }
 0x199   : > { %v1960_v28 = vsel %vm1929_vm6, %v1958_v14, %v1959_v20  ;;  %v1966_v52 = vsel %vm1927_vm5, %v1965_v18, %v1708_v60  ;;  %v2269_v22 = vsel %vm1927_vm5, %v2268_v24, %v1866_v27  ;;  %v2276_v45 = vsel %vm1927_vm5, %v2275_v38, %v1868_v5 }
 0x19a   : > { %v1076_v13 = vpop.f32.mrf.mxu2  ;;  %v1961_v2 = vsel %vm1931_vm7, %v1958_v14, %v1960_v28  ;;  %v1967_v10 = vsel %vm1929_vm6, %v1965_v18, %v1966_v52  ;;  %v2270_v31 = vsel %vm1929_vm6, %v2268_v24, %v2269_v22  ;;  %v2277_v36 = vsel %vm1929_vm6, %v2275_v38, %v2276_v45  ;;  %v4135_v49 = vpop.f32.mrf.mxu3 }
 0x19b   : > { %v1962_v40 = vsel %vm1933_vm8, %v1958_v14, %v1961_v2  ;;  %v1968_v15 = vsel %vm1931_vm7, %v1965_v18, %v1967_v10  ;;  %v2271_v50 = vsel %vm1931_vm7, %v2268_v24, %v2270_v31  ;;  %v2278_v4 = vsel %vm1931_vm7, %v2275_v38, %v2277_v36  ;;  %v989_v60 = vpop.f32.mrf.mxu1 }
 0x19c   : > { %v1969_v59 = vsel %vm1933_vm8, %v1965_v18, %v1968_v15  ;;  %v2056_v29 = vrot.slane %v1962_v40, 4  ;;  %v2272_v58 = vsel %vm1933_vm8, %v2268_v24, %v2271_v50  ;;  %v2279_v53 = vsel %vm1933_vm8, %v2275_v38, %v2278_v4  ;;  %v4164_v38 = vpop.f32.mrf.mxu0 }
 0x19d   : > { %v2073_v57 = vrot.slane %v1969_v59, 4  ;;  %v2366_v9 = vrot.slane %v2272_v58, 4  ;;  %v2382_v19 = vrot.slane %v2279_v53, 4  ;;  %v4141_v44 = vadd.f32 %v1369_v17, %v1368_v37 }
 0x19e   : > { %v2058_v48 = vsel %vm2057_vm9, %v2056_v29, %v4032_v42  ;;  %v1432_v14 = vrot.slane %v1291_v25, 4  ;;  %v1426_v5 = vrot.slane %v4090_v35, 4  ;;  %v1427_v42 = vrot.slane %v4090_v35, 6 }
 0x19f   : > { %v4144_v26 = vperm.slane %v2058_v48, %v4111_v55  ;;  %v4148_v27 = vsel %vm2057_vm9, %v2073_v57, %v4038_v6  ;;  %v4152_v54 = vsel %vm2057_vm9, %v2366_v9, %v4041_v16  ;;  %v4158_v37 = vsel %vm2057_vm9, %v2382_v19, %v4044_v33 }
 0x1a0   : > { %v1433_v18 = vrot.slane %v1291_v25, 6  ;;  %v1518_v6 = vmax.f32 %v4090_v35, %v1291_v25  ;;  %v1519_v24 = vmax.f32 %v1425_v56, %v1431_v46  ;;  %v1520_v16 = vmax.f32 %v1426_v5, %v1432_v14 }
 0x1a1   : > { %2123 = vst [vmem:[#allocation1] ss:$4 sm:$0xff] %v4144_v26  ;;  %v1550_v7 = vmin.f32 %v4090_v35, %v1291_v25  ;;  %v1551_v33 = vmin.f32 %v1425_v56, %v1431_v46  ;;  %v1552_v52 = vmin.f32 %v1426_v5, %v1432_v14  ;;  %v1105_v45 = vadd.f32 %v4106_v39, %v1015_v30 }
 0x1a2   : > { %v1521_v20 = vmax.f32 %v1427_v42, %v1433_v18  ;;  %v1079_v28 = vpop.f32.mrf.mxu2  ;;  %v1553_v22 = vmin.f32 %v1427_v42, %v1433_v18  ;;  %v2931_v2 = vrot.slane %v1518_v6, 9  ;;  %v2932_v10 = vrot.slane %v1519_v24, 9  ;;  %v1173_v59 = vpop.f32.mrf.mxu3 }
 0x1a3   : > { %v2933_v31 = vrot.slane %v1520_v16, 9  ;;  %v2963_v15 = vrot.slane %v1550_v7, 9  ;;  %v2964_v50 = vrot.slane %v1551_v33, 9  ;;  %v2965_v36 = vrot.slane %v1552_v52, 9  ;;  %v992_v39 = vpop.f32.mrf.mxu1 }
 0x1a4   : > { %v2934_v40 = vrot.slane %v1521_v20, 9  ;;  %v1711_v29 = vmax.f32 %v1519_v24, %v2932_v10  ;;  %v2966_v8 = vrot.slane %v1553_v22, 9  ;;  %v1016_v51 = vadd.f32 %v4113_v0, %v3929_v32 }
 0x1a5   : > { %v1710_v35 = vmax.f32 %v1518_v6, %v2931_v2  ;;  %v1712_v56 = vmax.f32 %v1520_v16, %v2933_v31  ;;  %v1871_v58 = vmin.f32 %v1551_v33, %v2964_v50  ;;  %v1199_v53 = vadd.f32 %v4108_v41, %v1105_v45  ;;  %v1266_v6 = vpop.f32.mrf.mxu0 }
 0x1a6   : > { %v1713_v25 = vmax.f32 %v1521_v20, %v2934_v40  ;;  %v1873_v4 = vmin.f32 %v1553_v22, %v2966_v8  ;;  %v1972_v57 = vrot.slane %v1711_v29, 7  ;;  %v1106_v9 = vadd.f32 %v1076_v13, %v1016_v51 }
 0x1a7   : > { %v1870_v17 = vmin.f32 %v1550_v7, %v2963_v15  ;;  %v1872_v48 = vmin.f32 %v1552_v52, %v2965_v36  ;;  %v2282_v46 = vrot.slane %v1871_v58, 7  ;;  %v4177_v42 = vadd.f32 %v4117_v23, %v1199_v53 }
 0x1a8   : > { %v1979_v19 = vrot.slane %v1713_v25, 7  ;;  %v1973_v14 = vsel %vm1927_vm5, %v1972_v57, %v1710_v35  ;;  %v2289_v5 = vrot.slane %v1873_v4, 7  ;;  %v1017_v32 = vadd.f32 %v989_v60, %v3940_v61 }
 0x1a9   : > { %v1974_v0 = vsel %vm1929_vm6, %v1972_v57, %v1973_v14  ;;  %v2283_v41 = vsel %vm1927_vm5, %v2282_v46, %v1870_v17  ;;  %v1200_v13 = vadd.f32 %v4135_v49, %v1106_v9  ;;  %v1316_v40 = vsel %vm1300_vm4, %v4177_v42, 0.0 }
 0x1aa   : > { %v1980_v18 = vsel %vm1927_vm5, %v1979_v19, %v1712_v56  ;;  %v1975_v24 = vsel %vm1931_vm7, %v1972_v57, %v1974_v0  ;;  %v2284_v20 = vsel %vm1929_vm6, %v2282_v46, %v2283_v41  ;;  %v2290_v23 = vsel %vm1927_vm5, %v2289_v5, %v1872_v48  ;;  %v1082_v30 = vpop.f32.mrf.mxu2  ;;  %v1176_v15 = vpop.f32.mrf.mxu3 }
 0x1ab   : > { %v1981_v16 = vsel %vm1929_vm6, %v1979_v19, %v1980_v18  ;;  %v1976_v61 = vsel %vm1933_vm8, %v1972_v57, %v1975_v24  ;;  %v2285_v7 = vsel %vm1931_vm7, %v2282_v46, %v2284_v20  ;;  %v2291_v33 = vsel %vm1929_vm6, %v2289_v5, %v2290_v23  ;;  %v995_v25 = vpop.f32.mrf.mxu1 }
 0x1ac   : > { %v1982_v60 = vsel %vm1931_vm7, %v1979_v19, %v1981_v16  ;;  %v2089_v52 = vrot.slane %v1976_v61, 4  ;;  %v2286_v22 = vsel %vm1933_vm8, %v2282_v46, %v2285_v7  ;;  %v2292_v2 = vsel %vm1931_vm7, %v2289_v5, %v2291_v33 }
 0x1ad   : > { %v1983_v49 = vsel %vm1933_vm8, %v1979_v19, %v1982_v60  ;;  %v2293_v31 = vsel %vm1933_vm8, %v2289_v5, %v2292_v2  ;;  %v2398_v45 = vrot.slane %v2286_v22, 4  ;;  %v1317_v29 = vadd.f32 %v1316_v40, %v4122_v11 }
 0x1ae   : > { %v2105_v10 = vrot.slane %v1983_v49, 4  ;;  %v4200_v50 = vsel %vm2057_vm9, %v2089_v52, %v4074_v34  ;;  %v2414_v36 = vrot.slane %v2293_v31, 4  ;;  %v1107_v8 = vadd.f32 %v1079_v28, %v1017_v32 }
 0x1af   : > { %v4209_v35 = vsel %vm2057_vm9, %v2398_v45, %v4083_v62  ;;  %v1348_v34 = vmul.f32 %v4177_v42, %v4177_v42  ;;  %v4218_v58 = vadd.f32 %v4164_v38, %v1200_v13  ;;  %v1018_v11 = vadd.f32 %v992_v39, %v3954_v3 }
 0x1b0   : > { %v4205_v51 = vsel %vm2057_vm9, %v2105_v10, %v4080_v21  ;;  %v4213_v56 = vsel %vm2057_vm9, %v2414_v36, %v4086_v63  ;;  %v1201_v28 = vadd.f32 %v1173_v59, %v1107_v8  ;;  %v1269_v21 = vpop.f32.mrf.mxu0  ;;  %v1434_v63 = vrot.slane %v4177_v42, 2 }
 0x1b1   : > { %v1371_v4 = vsel %vm1300_vm4, %v1348_v34, 0.0  ;;  %v1318_v62 = vsel %vm1300_vm4, %v4218_v58, 0.0  ;;  %v1108_v57 = vadd.f32 %v1082_v30, %v1018_v11  ;;  %v1435_v9 = vrot.slane %v4177_v42, 4 }
 0x1b2   : > { %v1085_v53 = vpop.f32.mrf.mxu2  ;;  %v1319_v17 = vadd.f32 %v1318_v62, %v1317_v29  ;;  %v1436_v48 = vrot.slane %v4177_v42, 6  ;;  %v1349_v38 = vmul.f32 %v4218_v58, %v4218_v58  ;;  %v4229_v3 = vadd.f32 %v1266_v6, %v1201_v28  ;;  %v1179_v14 = vpop.f32.mrf.mxu3 }
 0x1b3   : > { %v1019_v59 = vadd.f32 %v995_v25, %v3968_v47  ;;  %v1437_v39 = vrot.slane %v4218_v58, 2  ;;  %v1438_v19 = vrot.slane %v4218_v58, 4  ;;  %v1439_v46 = vrot.slane %v4218_v58, 6  ;;  %v998_v30 = vpop.f32.mrf.mxu1 }
 0x1b4   : > { %v4236_v5 = vadd.f32 %v1371_v4, %v4141_v44  ;;  %v1320_v32 = vsel %vm1300_vm4, %v4229_v3, 0.0  ;;  %v1440_v0 = vrot.slane %v4229_v3, 2  ;;  %v1441_v18 = vrot.slane %v4229_v3, 4 }
 0x1b5   : > { %v1202_v41 = vadd.f32 %v1176_v15, %v1108_v57  ;;  %v4242_v13 = vadd.f32 %v1320_v32, %v1319_v17  ;;  %v1442_v47 = vrot.slane %v4229_v3, 6  ;;  %v1522_v6 = vmax.f32 %v4177_v42, %v4229_v3 }
 0x1b6   : > { %v1554_v24 = vmin.f32 %v4177_v42, %v4229_v3  ;;  %v1523_v44 = vmax.f32 %v1434_v63, %v1440_v0  ;;  %v1524_v16 = vmax.f32 %v1435_v9, %v1441_v18  ;;  %v1555_v20 = vmin.f32 %v1434_v63, %v1440_v0 }
 0x1b7   : > { %v1556_v23 = vmin.f32 %v1435_v9, %v1441_v18  ;;  %v1525_v61 = vmax.f32 %v1436_v48, %v1442_v47  ;;  %v1557_v60 = vmin.f32 %v1436_v48, %v1442_v47  ;;  %v2935_v7 = vrot.slane %v1522_v6, 9 }
 0x1b8   : > { %v2967_v33 = vrot.slane %v1554_v24, 9  ;;  %v2936_v49 = vrot.slane %v1523_v44, 9  ;;  %v2937_v52 = vrot.slane %v1524_v16, 9  ;;  %v2968_v22 = vrot.slane %v1555_v20, 9  ;;  %v4250_v15 = vpop.f32.mrf.mxu0 }
 0x1b9   : > { %v2969_v2 = vrot.slane %v1556_v23, 9  ;;  %v2938_v10 = vrot.slane %v1525_v61, 9  ;;  %v2970_v31 = vrot.slane %v1557_v60, 9  ;;  %v1109_v45 = vadd.f32 %v1085_v53, %v1019_v59 }
 0x1ba   : > { %v1020_v40 = vadd.f32 %v998_v30, %v3980_v12  ;;  %v1714_v42 = vmax.f32 %v1522_v6, %v2935_v7  ;;  %v1715_v36 = vmax.f32 %v1523_v44, %v2936_v49  ;;  %v1875_v29 = vmin.f32 %v1555_v20, %v2968_v22  ;;  %v1088_v8 = vpop.f32.mrf.mxu2  ;;  %v1182_v59 = vpop.f32.mrf.mxu3 }
 0x1bb   : > { %v4253_v34 = vsel %vm1300_vm4, %v1349_v38, 0.0  ;;  %v1717_v25 = vmax.f32 %v1525_v61, %v2938_v10  ;;  %v1874_v11 = vmin.f32 %v1554_v24, %v2967_v33  ;;  %v1877_v28 = vmin.f32 %v1557_v60, %v2970_v31 }
 0x1bc   : > { %v4255_v4 = vadd.f32 %v1269_v21, %v1202_v41  ;;  %v1716_v62 = vmax.f32 %v1524_v16, %v2937_v52  ;;  %v1876_v57 = vmin.f32 %v1556_v23, %v2969_v2  ;;  %v1986_v63 = vrot.slane %v1715_v36, 7  ;;  %v1001_v52 = vpop.f32.mrf.mxu1 }
 0x1bd   : > { %v2296_v53 = vrot.slane %v1875_v29, 7  ;;  %v1993_v9 = vrot.slane %v1717_v25, 7  ;;  %v2303_v12 = vrot.slane %v1877_v28, 7  ;;  %v1203_v48 = vadd.f32 %v1179_v14, %v1109_v45 }
 0x1be   : > { %v1443_v17 = vrot.slane %v4255_v4, 2  ;;  %v1987_v32 = vsel %vm1927_vm5, %v1986_v63, %v1714_v42  ;;  %v1444_v0 = vrot.slane %v4255_v4, 4  ;;  %v1445_v18 = vrot.slane %v4255_v4, 6 }
 0x1bf   : > { %v2297_v38 = vsel %vm1927_vm5, %v2296_v53, %v1874_v11  ;;  %v1988_v21 = vsel %vm1929_vm6, %v1986_v63, %v1987_v32  ;;  %v1994_v41 = vsel %vm1927_vm5, %v1993_v9, %v1716_v62  ;;  %v2304_v6 = vsel %vm1927_vm5, %v2303_v12, %v1876_v57 }
 0x1c0   : > { %v2298_v47 = vsel %vm1929_vm6, %v2296_v53, %v2297_v38  ;;  %v1989_v24 = vsel %vm1931_vm7, %v1986_v63, %v1988_v21  ;;  %v1995_v14 = vsel %vm1929_vm6, %v1993_v9, %v1994_v41  ;;  %v2305_v16 = vsel %vm1929_vm6, %v2303_v12, %v2304_v6  ;;  %v1275_v45 = vpop.f32.mrf.mxu0 }
 0x1c1   : > { %v2299_v44 = vsel %vm1931_vm7, %v2296_v53, %v2298_v47  ;;  %v4271_v20 = vsel %vm1933_vm8, %v1986_v63, %v1989_v24  ;;  %v1996_v23 = vsel %vm1931_vm7, %v1993_v9, %v1995_v14  ;;  %v2306_v61 = vsel %vm1931_vm7, %v2303_v12, %v2305_v16 }
 0x1c2   : > { %v4275_v30 = vsel %vm1933_vm8, %v2296_v53, %v2299_v44  ;;  %v4279_v60 = vsel %vm1933_vm8, %v1993_v9, %v1996_v23  ;;  %v4282_v7 = vsel %vm1933_vm8, %v2303_v12, %v2306_v61  ;;  %v1526_v33 = vmax.f32 %v4218_v58, %v4255_v4  ;;  %v1091_v11 = vpop.f32.mrf.mxu2 }
 0x1c3   : > { %v1527_v49 = vmax.f32 %v1437_v39, %v1443_v17  ;;  %v1528_v22 = vmax.f32 %v1438_v19, %v1444_v0  ;;  %v1529_v2 = vmax.f32 %v1439_v46, %v1445_v18  ;;  %v1558_v10 = vmin.f32 %v4218_v58, %v4255_v4  ;;  %v1185_v58 = vpop.f32.mrf.mxu3 }
 0x1c4   : > { %v1559_v31 = vmin.f32 %v1437_v39, %v1443_v17  ;;  %v1560_v42 = vmin.f32 %v1438_v19, %v1444_v0  ;;  %v1561_v36 = vmin.f32 %v1439_v46, %v1445_v18  ;;  %v2939_v29 = vrot.slane %v1526_v33, 9 }
 0x1c5   : > { %v2940_v25 = vrot.slane %v1527_v49, 9  ;;  %v2941_v28 = vrot.slane %v1528_v22, 9  ;;  %v2942_v62 = vrot.slane %v1529_v2, 9  ;;  %v2971_v57 = vrot.slane %v1558_v10, 9 }
 0x1c6   : > { %v2972_v63 = vrot.slane %v1559_v31, 9  ;;  %v2973_v9 = vrot.slane %v1560_v42, 9  ;;  %v2974_v12 = vrot.slane %v1561_v36, 9  ;;  %v1110_v32 = vadd.f32 %v1088_v8, %v1020_v40 }
 0x1c7   : > { %v1719_v53 = vmax.f32 %v1527_v49, %v2940_v25  ;;  %v1322_v39 = vsel %vm1300_vm4, %v4255_v4, 0.0  ;;  %v1721_v17 = vmax.f32 %v1529_v2, %v2942_v62  ;;  %v1021_v19 = vadd.f32 %v1001_v52, %v3989_v1  ;;  %v1004_v2 = vpop.f32.mrf.mxu1 }
 0x1c8   : > { %v1879_v38 = vmin.f32 %v1559_v31, %v2972_v63  ;;  %v1718_v46 = vmax.f32 %v1526_v33, %v2939_v29  ;;  %v1720_v0 = vmax.f32 %v1528_v22, %v2941_v28  ;;  %v1881_v18 = vmin.f32 %v1561_v36, %v2974_v12  ;;  %v1278_v31 = vpop.f32.mrf.mxu0 }
 0x1c9   : > { %v2000_v21 = vrot.slane %v1719_v53, 7  ;;  %v1878_v41 = vmin.f32 %v1558_v10, %v2971_v57  ;;  %v1880_v47 = vmin.f32 %v1560_v42, %v2973_v9  ;;  %v2007_v6 = vrot.slane %v1721_v17, 7 }
 0x1ca   : > { %v2310_v24 = vrot.slane %v1879_v38, 7  ;;  %v2317_v44 = vrot.slane %v1881_v18, 7  ;;  %v4305_v40 = vadd.f32 %v4250_v15, %v1203_v48  ;;  %v1204_v8 = vadd.f32 %v1182_v59, %v1110_v32 }
 0x1cb   : > { %v2001_v14 = vsel %vm1927_vm5, %v2000_v21, %v1718_v46  ;;  %v2008_v1 = vsel %vm1927_vm5, %v2007_v6, %v1720_v0  ;;  %v1111_v61 = vadd.f32 %v1091_v11, %v1021_v19  ;;  %v1094_v11 = vpop.f32.mrf.mxu2  ;;  %v1022_v62 = vadd.f32 %v1004_v2, %v3995_v43  ;;  %v1188_v17 = vpop.f32.mrf.mxu3 }
 0x1cc   : > { %v2002_v16 = vsel %vm1929_vm6, %v2000_v21, %v2001_v14  ;;  %v2311_v23 = vsel %vm1927_vm5, %v2310_v24, %v1878_v41  ;;  %v2009_v49 = vsel %vm1929_vm6, %v2007_v6, %v2008_v1  ;;  %v2318_v22 = vsel %vm1927_vm5, %v2317_v44, %v1880_v47 }
 0x1cd   : > { %v2003_v33 = vsel %vm1931_vm7, %v2000_v21, %v2002_v16  ;;  %v2312_v52 = vsel %vm1929_vm6, %v2310_v24, %v2311_v23  ;;  %v2010_v48 = vsel %vm1931_vm7, %v2007_v6, %v2009_v49  ;;  %v2319_v10 = vsel %vm1929_vm6, %v2317_v44, %v2318_v22 }
 0x1ce   : > { %v4315_v15 = vsel %vm1933_vm8, %v2000_v21, %v2003_v33  ;;  %v2313_v59 = vsel %vm1931_vm7, %v2310_v24, %v2312_v52  ;;  %v4321_v42 = vsel %vm1933_vm8, %v2007_v6, %v2010_v48  ;;  %v2320_v29 = vsel %vm1931_vm7, %v2317_v44, %v2319_v10 }
 0x1cf   : > { %v4324_v36 = vsel %vm1933_vm8, %v2310_v24, %v2313_v59  ;;  %v4327_v25 = vadd.f32 %v1275_v45, %v1204_v8  ;;  %v4330_v28 = vsel %vm1933_vm8, %v2317_v44, %v2320_v29  ;;  %v1205_v57 = vadd.f32 %v1185_v58, %v1111_v61 }
 0x1d0   : > { %v1323_v63 = vadd.f32 %v1322_v39, %v4242_v13  ;;  %v1446_v53 = vrot.slane %v4305_v40, 2  ;;  %v1447_v9 = vrot.slane %v4305_v40, 4  ;;  %v1324_v12 = vsel %vm1300_vm4, %v4305_v40, 0.0  ;;  %v1281_v22 = vpop.f32.mrf.mxu0 }
 0x1d1   : > { %v4338_v32 = vadd.f32 %v1278_v31, %v1205_v57  ;;  %v1112_v45 = vadd.f32 %v1094_v11, %v1022_v62  ;;  %v1326_v19 = vsel %vm1300_vm4, %v4327_v25, 0.0  ;;  %v1448_v43 = vrot.slane %v4305_v40, 6 }
 0x1d2   : > { %v1325_v38 = vadd.f32 %v1324_v12, %v1323_v63  ;;  %v1449_v58 = vrot.slane %v4327_v25, 2  ;;  %v1450_v13 = vrot.slane %v4327_v25, 4  ;;  %v4347_v39 = vadd.f32 %v4253_v34, %v4236_v5 }
 0x1d3   : > { %v1452_v46 = vrot.slane %v4338_v32, 2  ;;  %v1453_v0 = vrot.slane %v4338_v32, 4  ;;  %v1454_v18 = vrot.slane %v4338_v32, 6  ;;  %v1530_v21 = vmax.f32 %v4305_v40, %v4338_v32 }
 0x1d4   : > { %v1562_v41 = vmin.f32 %v4305_v40, %v4338_v32  ;;  %v1206_v47 = vadd.f32 %v1188_v17, %v1112_v45  ;;  %v1327_v6 = vadd.f32 %v1326_v19, %v1325_v38  ;;  %v1328_v24 = vsel %vm1300_vm4, %v4338_v32, 0.0 }
 0x1d5   : > { %v1531_v14 = vmax.f32 %v1446_v53, %v1452_v46  ;;  %v1532_v5 = vmax.f32 %v1447_v9, %v1453_v0  ;;  %v1533_v34 = vmax.f32 %v1448_v43, %v1454_v18  ;;  %v1563_v44 = vmin.f32 %v1446_v53, %v1452_v46 }
 0x1d6   : > { %v1564_v8 = vmin.f32 %v1447_v9, %v1453_v0  ;;  %v1565_v16 = vmin.f32 %v1448_v43, %v1454_v18  ;;  %v2943_v1 = vrot.slane %v1530_v21, 9  ;;  %v2975_v23 = vrot.slane %v1562_v41, 9 }
 0x1d7   : > { %v2944_v61 = vrot.slane %v1531_v14, 9  ;;  %v2945_v33 = vrot.slane %v1532_v5, 9  ;;  %v2946_v49 = vrot.slane %v1533_v34, 9  ;;  %v2976_v52 = vrot.slane %v1563_v44, 9 }
 0x1d8   : > { %v1451_v2 = vrot.slane %v4327_v25, 6  ;;  %v1722_v48 = vmax.f32 %v1530_v21, %v2943_v1  ;;  %v2977_v59 = vrot.slane %v1564_v8, 9  ;;  %v2978_v10 = vrot.slane %v1565_v16, 9 }
 0x1d9   : > { %v1723_v31 = vmax.f32 %v1531_v14, %v2944_v61  ;;  %v1725_v29 = vmax.f32 %v1533_v34, %v2946_v49  ;;  %v1882_v11 = vmin.f32 %v1562_v41, %v2975_v23  ;;  %v1883_v62 = vmin.f32 %v1563_v44, %v2976_v52 }
 0x1da   : > { %v1724_v57 = vmax.f32 %v1532_v5, %v2945_v33  ;;  %v1885_v63 = vmin.f32 %v1565_v16, %v2978_v10  ;;  %v4359_v53 = vadd.f32 %v1281_v22, %v1206_v47  ;;  %v4361_v9 = vadd.f32 %v1328_v24, %v1327_v6 }
 0x1db   : > { %v1884_v12 = vmin.f32 %v1564_v8, %v2977_v59  ;;  %v2014_v45 = vrot.slane %v1723_v31, 7  ;;  %v2021_v17 = vrot.slane %v1725_v29, 7  ;;  %v2324_v38 = vrot.slane %v1883_v62, 7 }
 0x1dc   : > { %v2331_v19 = vrot.slane %v1885_v63, 7  ;;  %v1455_v43 = vrot.slane %v4359_v53, 2  ;;  %v1456_v46 = vrot.slane %v4359_v53, 4  ;;  %v1457_v0 = vrot.slane %v4359_v53, 6 }
 0x1dd   : > { %v2015_v18 = vsel %vm1927_vm5, %v2014_v45, %v1722_v48  ;;  %v2022_v21 = vsel %vm1927_vm5, %v2021_v17, %v1724_v57  ;;  %v2325_v41 = vsel %vm1927_vm5, %v2324_v38, %v1882_v11  ;;  %v1534_v47 = vmax.f32 %v4327_v25, %v4359_v53 }
 0x1de   : > { %v2016_v6 = vsel %vm1929_vm6, %v2014_v45, %v2015_v18  ;;  %v2023_v24 = vsel %vm1929_vm6, %v2021_v17, %v2022_v21  ;;  %v2326_v14 = vsel %vm1929_vm6, %v2324_v38, %v2325_v41  ;;  %v2332_v5 = vsel %vm1927_vm5, %v2331_v19, %v1884_v12 }
 0x1df   : > { %v2017_v34 = vsel %vm1931_vm7, %v2014_v45, %v2016_v6  ;;  %v2024_v44 = vsel %vm1931_vm7, %v2021_v17, %v2023_v24  ;;  %v2327_v8 = vsel %vm1931_vm7, %v2324_v38, %v2326_v14  ;;  %v2333_v16 = vsel %vm1929_vm6, %v2331_v19, %v2332_v5 }
 0x1e0   : > { %v2018_v1 = vsel %vm1933_vm8, %v2014_v45, %v2017_v34  ;;  %v2025_v23 = vsel %vm1933_vm8, %v2021_v17, %v2024_v44  ;;  %v2328_v61 = vsel %vm1933_vm8, %v2324_v38, %v2327_v8  ;;  %v2334_v33 = vsel %vm1931_vm7, %v2331_v19, %v2333_v16 }
 0x1e1   : > { %v2065_v49 = vrot.slane %v2018_v1, 4  ;;  %v2081_v52 = vrot.slane %v2025_v23, 4  ;;  %v2335_v22 = vsel %vm1933_vm8, %v2331_v19, %v2334_v33  ;;  %v2374_v48 = vrot.slane %v2328_v61, 4 }
 0x1e2   : > { %v2390_v59 = vrot.slane %v2335_v22, 4  ;;  %v1535_v10 = vmax.f32 %v1449_v58, %v1455_v43  ;;  %v1536_v31 = vmax.f32 %v1450_v13, %v1456_v46  ;;  %v1537_v29 = vmax.f32 %v1451_v2, %v1457_v0 }
 0x1e3   : > { %v2066_v11 = vsel %vm2057_vm9, %v2065_v49, %v4271_v20  ;;  %v4392_v62 = vsel %vm2057_vm9, %v2081_v52, %v4279_v60  ;;  %v4396_v57 = vsel %vm2057_vm9, %v2374_v48, %v4275_v30  ;;  %v1566_v63 = vmin.f32 %v4327_v25, %v4359_v53 }
 0x1e4   : > { %v2063_v12 = vrot.slane %v4144_v26, 4  ;;  %v2070_v45 = vperm.slane %v2066_v11, %v4111_v55  ;;  %v4404_v17 = vsel %vm2057_vm9, %v2390_v59, %v4282_v7  ;;  %v1567_v20 = vmin.f32 %v1449_v58, %v1455_v43 }
 0x1e5   : > { %v1568_v60 = vmin.f32 %v1450_v13, %v1456_v46  ;;  %v1569_v38 = vmin.f32 %v1451_v2, %v1457_v0  ;;  %v2947_v30 = vrot.slane %v1534_v47, 9  ;;  %v2948_v19 = vrot.slane %v1535_v10, 9 }
 0x1e6   : > { %2125 = vst [vmem:[#allocation1 + $0x1] ss:$4 sm:$0xff] %v2070_v45  ;;  %v2949_v18 = vrot.slane %v1536_v31, 9  ;;  %v2950_v21 = vrot.slane %v1537_v29, 9  ;;  %v2064_v26 = vsel %vm2057_vm9, 0.0, %v2063_v12  ;;  %v1350_v41 = vmul.f32 %v4229_v3, %v4229_v3 }
 0x1e7   : > { %v2071_v6 = vrot.slane %v2070_v45, 4  ;;  %v1351_v7 = vmul.f32 %v4255_v4, %v4255_v4  ;;  %v1726_v24 = vmax.f32 %v1534_v47, %v2947_v30  ;;  %v1727_v58 = vmax.f32 %v1535_v10, %v2948_v19 }
 0x1e8   : > { %v1729_v43 = vmax.f32 %v1537_v29, %v2950_v21  ;;  %v1352_v13 = vmul.f32 %v4305_v40, %v4305_v40  ;;  %v2979_v2 = vrot.slane %v1566_v63, 9  ;;  %v2980_v46 = vrot.slane %v1567_v20, 9 }
 0x1e9   : > { %v2981_v0 = vrot.slane %v1568_v60, 9  ;;  %v2982_v14 = vrot.slane %v1569_v38, 9  ;;  %v1728_v5 = vmax.f32 %v1536_v31, %v2949_v18  ;;  %v2028_v34 = vrot.slane %v1727_v58, 7 }
 0x1ea   : > { %v2035_v44 = vrot.slane %v1729_v43, 7  ;;  %v1330_v3 = vsel %vm1300_vm4, %v4359_v53, 0.0  ;;  %v2072_v8 = vsel %vm2057_vm9, 0.0, %v2071_v6  ;;  %v1886_v16 = vmin.f32 %v1566_v63, %v2979_v2 }
 0x1eb   : > { %v1887_v4 = vmin.f32 %v1567_v20, %v2980_v46  ;;  %v1889_v47 = vmin.f32 %v1569_v38, %v2982_v14  ;;  %v1888_v23 = vmin.f32 %v1568_v60, %v2981_v0  ;;  %v2029_v40 = vsel %vm1927_vm5, %v2028_v34, %v1726_v24 }
 0x1ec   : > { %v2036_v61 = vsel %vm1927_vm5, %v2035_v44, %v1728_v5  ;;  %v1331_v33 = vadd.f32 %v1330_v3, %v4361_v9  ;;  %v2030_v49 = vsel %vm1929_vm6, %v2028_v34, %v2029_v40  ;;  %v1375_v29 = vsel %vm1300_vm4, %v1350_v41, 0.0 }
 0x1ed   : > { %v4420_v1 = vld.sshfl [vmem:[#allocation1] sm:$0xff pattern:$0x73625140]  ;;  %v2037_v52 = vsel %vm1929_vm6, %v2035_v44, %v2036_v61  ;;  %v2338_v22 = vrot.slane %v1887_v4, 7  ;;  %v2345_v48 = vrot.slane %v1889_v47, 7  ;;  %v2031_v59 = vsel %vm1931_vm7, %v2028_v34, %v2030_v49 }
 0x1ee   : > { %2130 = vst [vmem:[#allocation1] ss:$4 sm:$0xff] %v2064_v26  ;;  %v2038_v10 = vsel %vm1931_vm7, %v2035_v44, %v2037_v52  ;;  %v1332_v31 = vrot.slane %v1331_v33, 4  ;;  %v2032_v11 = vsel %vm1933_vm8, %v2028_v34, %v2031_v59  ;;  %v1376_v21 = vadd.f32 %v1375_v29, %v4347_v39 }
 0x1ef   : > { %2132 = vst [vmem:[#allocation1 + $0x1] ss:$4 sm:$0xff] %v2072_v8  ;;  %v2039_v63 = vsel %vm1933_vm8, %v2035_v44, %v2038_v10  ;;  %v2339_v9 = vsel %vm1927_vm5, %v2338_v22, %v1886_v16  ;;  %v2346_v12 = vsel %vm1927_vm5, %v2345_v48, %v1888_v23  ;;  %v2097_v45 = vrot.slane %v2032_v11, 4 }
 0x1f0   : > { %v2113_v20 = vrot.slane %v2039_v63, 4  ;;  %v2340_v60 = vsel %vm1929_vm6, %v2338_v22, %v2339_v9  ;;  %v2347_v38 = vsel %vm1929_vm6, %v2345_v48, %v2346_v12  ;;  %v1333_v18 = vadd.f32 %v1332_v31, %v1331_v33 }
 0x1f1   : > { %v2341_v30 = vsel %vm1931_vm7, %v2338_v22, %v2340_v60  ;;  %v2348_v19 = vsel %vm1931_vm7, %v2345_v48, %v2347_v38  ;;  %v2098_v26 = vsel %vm2057_vm9, %v2097_v45, %v4315_v15  ;;  %v2078_v2 = vperm.slane %v4148_v27, %v4111_v55 }
 0x1f2   : > { %v4443_v41 = vsel %vm2057_vm9, %v2113_v20, %v4321_v42  ;;  %v2342_v6 = vsel %vm1933_vm8, %v2338_v22, %v2341_v30  ;;  %v2349_v24 = vsel %vm1933_vm8, %v2345_v48, %v2348_v19  ;;  %v1334_v46 = vrot.slane %v1333_v18, 2 }
 0x1f3   : > { %v2406_v58 = vrot.slane %v2342_v6, 4  ;;  %v2422_v43 = vrot.slane %v2349_v24, 4  ;;  %v1353_v39 = vmul.f32 %v4327_v25, %v4327_v25  ;;  %v1377_v15 = vsel %vm1300_vm4, %v1351_v7, 0.0 }
 0x1f4   : > { %v2086_v42 = vperm.slane %v4392_v62, %v4111_v55  ;;  %v1335_v27 = vadd.f32 %v1334_v46, %v1333_v18  ;;  %v1354_v25 = vmul.f32 %v4338_v32, %v4338_v32  ;;  %v1379_v62 = vsel %vm1300_vm4, %v1352_v13, 0.0 }
 0x1f5   : > { %v4456_v14 = vsel %vm2057_vm9, %v2406_v58, %v4324_v36  ;;  %v4460_v5 = vsel %vm2057_vm9, %v2422_v43, %v4330_v28  ;;  %v1378_v36 = vadd.f32 %v1377_v15, %v1376_v21  ;;  %v1355_v28 = vmul.f32 %v4359_v53, %v4359_v53 }
 0x1f6   : > { %v2133_v0 = vld.sshfl [vmem:[#allocation1] sm:$0xff pattern:$0x73625140]  ;;  %v1336_v7 = vrot.slane %v1335_v27, 1  ;;  %v1381_v34 = vsel %vm1300_vm4, %v1353_v39, 0.0  ;;  %v2079_v3 = vrot.slane %v2078_v2, 4  ;;  %v2094_v22 = vperm.slane %v4200_v50, %v4111_v55 }
 0x1f7   : > { %2139 = vst [vmem:[#allocation1] ss:$4 sm:$0xff] %v2078_v2  ;;  %2134 = vrot.lane.b32.xlu0 %v2133_v0, %s3281_s17  ;;  %v1380_v44 = vadd.f32 %v1379_v62, %v1378_v36  ;;  %v1383_v16 = vsel %vm1300_vm4, %v1354_v25, 0.0  ;;  %v2087_v4 = vrot.slane %v2086_v42, 4  ;;  %v1385_v32 = vsel %vm1300_vm4, %v1355_v28, 0.0 }
 0x1f8   : > { %2141 = vst [vmem:[#allocation1 + $0x1] ss:$4 sm:$0xff] %v2086_v42  ;;  %v1337_v8 = vadd.f32 %v1336_v7, %v1335_v27  ;;  %v2080_v23 = vsel %vm2057_vm9, 0.0, %v2079_v3  ;;  %v2102_v59 = vperm.slane %v2098_v26, %v4111_v55  ;;  %v2095_v11 = vrot.slane %v2094_v22, 4 }
 0x1f9   : > { %v1382_v47 = vadd.f32 %v1381_v34, %v1380_v44  ;;  %v2088_v40 = vsel %vm2057_vm9, 0.0, %v2087_v4  ;;  %v2110_v45 = vperm.slane %v4205_v51, %v4111_v55  ;;  %v2118_v20 = vperm.slane %v4443_v41, %v4111_v55 }
 0x1fa   : > { %1339 = vst.msk [vmem:[%s4677_s9] sm:$0x1] %vm1338_vm10, %v1337_v8  ;;  %v2103_v63 = vrot.slane %v2102_v59, 4  ;;  %v2096_v9 = vsel %vm2057_vm9, 0.0, %v2095_v11  ;;  %v2379_v51 = vperm.slane %v4396_v57, %v4111_v55  ;;  %v2371_v26 = vperm.slane %v4152_v54, %v4111_v55  ;;  %s3287_s9 = smov 56  }
 0x1fb   : > { %v1384_v13 = vadd.f32 %v1383_v16, %v1382_v47  ;;  %v2111_v38 = vrot.slane %v2110_v45, 4  ;;  %v2119_v30 = vrot.slane %v2118_v20, 4  ;;  %v2387_v46 = vperm.slane %v4158_v37, %v4111_v55 }
 0x1fc   : > { %v2104_v12 = vsel %vm2057_vm9, 0.0, %v2103_v63  ;;  %v2372_v6 = vrot.slane %v2371_v26, 4  ;;  %v2380_v24 = vrot.slane %v2379_v51, 4  ;;  %v2395_v57 = vperm.slane %v4404_v17, %v4111_v55 }
 0x1fd   : > { %v1386_v61 = vadd.f32 %v1385_v32, %v1384_v13  ;;  %v2112_v19 = vsel %vm2057_vm9, 0.0, %v2111_v38  ;;  %v2120_v21 = vsel %vm2057_vm9, 0.0, %v2119_v30  ;;  %v2388_v39 = vrot.slane %v2387_v46, 4 }
 0x1fe   : > { %v2373_v58 = vsel %vm2057_vm9, 0.0, %v2372_v6  ;;  %v2381_v2 = vsel %vm2057_vm9, 0.0, %v2380_v24  ;;  %v2396_v15 = vrot.slane %v2395_v57, 4  ;;  %v2403_v37 = vperm.slane %v4209_v35, %v4111_v55 }
 0x1ff   : > { %v2142_v53 = vld.sshfl [vmem:[#allocation1] sm:$0xff pattern:$0x73625140]  ;;  %v1387_v33 = vrot.slane %v1386_v61, 4  ;;  %v2389_v42 = vsel %vm2057_vm9, 0.0, %v2388_v39  ;;  %v2411_v17 = vperm.slane %v4456_v14, %v4111_v55  ;;  %v2419_v35 = vperm.slane %v4213_v56, %v4111_v55 }
 0x200   : > { %2148 = vst [vmem:[#allocation1] ss:$4 sm:$0xff] %v2080_v23  ;;  %2143 = vrot.lane.b32.xlu1 %v2142_v53, %s3282_s27  ;;  %v2397_v27 = vsel %vm2057_vm9, 0.0, %v2396_v15  ;;  %v2404_v62 = vrot.slane %v2403_v37, 4  ;;  %v2427_v14 = vperm.slane %v4460_v5, %v4111_v55 }
 0x201   : > { %2150 = vst [vmem:[#allocation1 + $0x1] ss:$4 sm:$0xff] %v2088_v40  ;;  %v1388_v49 = vadd.f32 %v1387_v33, %v1386_v61  ;;  %v2412_v36 = vrot.slane %v2411_v17, 4  ;;  %v2420_v3 = vrot.slane %v2419_v35, 4 }
 0x202   : > { %v2405_v7 = vsel %vm2057_vm9, 0.0, %v2404_v62  ;;  %v2428_v8 = vrot.slane %v2427_v14, 4 }
 0x203   : > { %v1389_v52 = vrot.slane %v1388_v49, 2  ;;  %v2413_v34 = vsel %vm2057_vm9, 0.0, %v2412_v36  ;;  %v2421_v16 = vsel %vm2057_vm9, 0.0, %v2420_v3 }
 0x204   : > { %v2429_v56 = vsel %vm2057_vm9, 0.0, %v2428_v8 }
 0x205   : > { %v1390_v10 = vadd.f32 %v1389_v52, %v1388_v49 }
 0x207   : > { %v1391_v31 = vrot.slane %v1390_v10, 1 }
 0x208   : > { %v2151_v48 = vld.sshfl [vmem:[#allocation1] sm:$0xff pattern:$0x73625140] }
 0x209   : > { %2157 = vst [vmem:[#allocation1] ss:$4 sm:$0xff] %v2094_v22  ;;  %2152 = vrot.lane.b32.xlu2 %v2151_v48, %s3283_s30  ;;  %v1392_v29 = vadd.f32 %v1391_v31, %v1390_v10 }
 0x20a   : > { %2159 = vst [vmem:[#allocation1 + $0x1] ss:$4 sm:$0xff] %v2102_v59 }
 0x20b   : > { %1393 = vst.msk [vmem:[%s273_s10] sm:$0x1] %vm1338_vm10, %v1392_v29 }
 0x211   : > { %v2160_v50 = vld.sshfl [vmem:[#allocation1] sm:$0xff pattern:$0x73625140] }
 0x212   : > { %2166 = vst [vmem:[#allocation1] ss:$4 sm:$0xff] %v2096_v9  ;;  %2161 = vrot.lane.b32.xlu1 %v2160_v50, %s3284_s12 }
 0x213   : > { %2168 = vst [vmem:[#allocation1 + $0x1] ss:$4 sm:$0xff] %v2104_v12 }
 0x21a   : > { %v2169_v60 = vld.sshfl [vmem:[#allocation1] sm:$0xff pattern:$0x73625140] }
 0x21b   : > { %2175 = vst [vmem:[#allocation1] ss:$4 sm:$0xff] %v2110_v45  ;;  %2170 = vrot.lane.b32.xlu0 %v2169_v60, %s3285_s13 }
 0x21c   : > { %2177 = vst [vmem:[#allocation1 + $0x1] ss:$4 sm:$0xff] %v2118_v20 }
 0x223   : > { %v2178_v18 = vld.sshfl [vmem:[#allocation1] sm:$0xff pattern:$0x73625140] }
 0x224   : > { %2184 = vst [vmem:[#allocation1] ss:$4 sm:$0xff] %v2112_v19 }
 0x225   : > { %2186 = vst [vmem:[#allocation1 + $0x1] ss:$4 sm:$0xff] %v2120_v21 }
 0x22c   : > { %v2187_v41 = vld.sshfl [vmem:[#allocation1] sm:$0xff pattern:$0x73625140] }
 0x22d   : > { %2434 = vst [vmem:[#allocation1 + $0x1] ss:$4 sm:$0xff] %v2379_v51 }
 0x22e   : > { %2432 = vst [vmem:[#allocation1] ss:$4 sm:$0xff] %v2371_v26 }
 0x235   : > { %v4504_v43 = vld.sshfl [vmem:[#allocation1] sm:$0xff pattern:$0x73625140] }
 0x236   : > { %2439 = vst [vmem:[#allocation1] ss:$4 sm:$0xff] %v2373_v58 }
 0x237   : > { %2441 = vst [vmem:[#allocation1 + $0x1] ss:$4 sm:$0xff] %v2381_v2 }
 0x23e   : > { %v2442_v54 = vld.sshfl [vmem:[#allocation1] sm:$0xff pattern:$0x73625140] }
 0x23f   : > { %2443 = vrot.lane.b32.xlu0 %v2442_v54, %s3281_s17  ;;  %2448 = vst [vmem:[#allocation1] ss:$4 sm:$0xff] %v2387_v46 }
 0x240   : > { %2450 = vst [vmem:[#allocation1 + $0x1] ss:$4 sm:$0xff] %v2395_v57 }
 0x247   : > { %v2451_v0 = vld.sshfl [vmem:[#allocation1] sm:$0xff pattern:$0x73625140] }
 0x248   : > { %2452 = vrot.lane.b32.xlu1 %v2451_v0, %s3282_s27  ;;  %2457 = vst [vmem:[#allocation1] ss:$4 sm:$0xff] %v2389_v42 }
 0x249   : > { %2459 = vst [vmem:[#allocation1 + $0x1] ss:$4 sm:$0xff] %v2397_v27 }
 0x250   : > { %v2460_v25 = vld.sshfl [vmem:[#allocation1] sm:$0xff pattern:$0x73625140] }
 0x251   : > { %2461 = vrot.lane.b32.xlu2 %v2460_v25, %s3283_s30  ;;  %2466 = vst [vmem:[#allocation1] ss:$4 sm:$0xff] %v2403_v37  ;;  %s2580_s30 = scalar_lea.hbm %s4696_s5, %s4532_s16 }
 0x252   : > { %2468 = vst [vmem:[#allocation1 + $0x1] ss:$4 sm:$0xff] %v2411_v17 }
 0x259   : > { %v2469_v28 = vld.sshfl [vmem:[#allocation1] sm:$0xff pattern:$0x73625140] }
 0x25a   : > { %2470 = vrot.lane.b32.xlu0 %v2469_v28, %s3284_s12  ;;  %2475 = vst [vmem:[#allocation1] ss:$4 sm:$0xff] %v2405_v7  ;;  %s2582_s12 = sshll.u32 %s273_s10, 4  ;;  %s2583_s12 = int_to_ptr.vmem [resolvable:$true] %s2582_s12 }
 0x25b   : > { %2477 = vst [vmem:[#allocation1 + $0x1] ss:$4 sm:$0xff] %v2413_v34 }
 0x262   : > { %v2478_v44 = vld.sshfl [vmem:[#allocation1] sm:$0xff pattern:$0x73625140] }
 0x263   : > { %2479 = vrot.lane.b32.xlu2 %v2478_v44, %s3285_s13  ;;  %2484 = vst [vmem:[#allocation1] ss:$4 sm:$0xff] %v2419_v35  ;;  %s2584_s13 = sshll.u32 %s2580_s30, 4  ;;  %s2585_s13 = int_to_ptr.hbm [resolvable:$true] %s2584_s13 }
 0x264   : > { %2486 = vst [vmem:[#allocation1 + $0x1] ss:$4 sm:$0xff] %v2427_v14  ;;  %s3106_s26 = sshra.s32 %s2585_s13, 4  ;;  %s3107_s26 = int_to_ptr.hbm [resolvable:$true] %s3106_s26 }
 0x265   : > { %s3108_s0 = scalar_lea.hbm %s3107_s26, 1  ;;  %p3113_p4 = scmp.lt.s32.totalorder %s3107_s26, %s4696_s5 }
 0x266   : > { %p3109_p0 = scmp.ne.s32.totalorder %s3107_s26, %s3108_s0  ;;  %p3114_p5 = scmp.lt.s32.totalorder %s3112_s15, %s3108_s0 }
 0x268   : > { %p3110_p1 = pnand %p3109_p0, %p3371_p3  ;;  %p3115_p6 = por %p3114_p5, %p3113_p4 }
 0x26a   : > { %p3111_p2 = pneg %p3110_p1 }
 0x26b   : > { %2179 = vrot.lane.b32.xlu2 %v2178_v18, %s3286_s14  ;;  %v2487_v4 = vld.sshfl [vmem:[#allocation1] sm:$0xff pattern:$0x73625140] }
 0x26c   : > { %2488 = vrot.lane.b32.xlu1 %v2487_v4, %s3286_s14  ;;  %2493 = vst [vmem:[#allocation1] ss:$4 sm:$0xff] %v2421_v16  ;;  %s2523_s14 = scalar_lea.sflag [#allocation8], %s4464_s8  ;;  %p3116_p7 = pnand %p3115_p6, %p3111_p2 }
 0x26d   : > { %2495 = vst [vmem:[#allocation1 + $0x1] ss:$4 sm:$0xff] %v2429_v56 }
 0x274   : > { %2188 = vrot.lane.b32.xlu1 %v2187_v41, %s3287_s9  ;;  %v2496_v55 = vld.sshfl [vmem:[#allocation1] sm:$0xff pattern:$0x73625140] }
 0x275   : > { %3119 = shalt.err (!%p3116_p7)
}
 0x276   : > { %3001 = dma.vmem_to_hbm [thread:$0]  (%p3371_p3), %s2583_s12, 16, %s2585_s13, %s2523_s14   ;;  %2497 = vrot.lane.b32.xlu0 %v2496_v55, %s3287_s9  ;;  %v2144_v5 = vpop.permute.xlu1 %2143  ;;  %v2135_v47 = vpop.permute.xlu0 %2134  ;;  %vm2192_vm11 = vcmask 130048   ;;  %vm2194_vm12 = vcmask 195584   ;;  %vm2196_vm13 = vcmask 261120   ;;  %vm2198_vm14 = vcmask 326656  }
 0x277   : > { %v2153_v32 = vpop.permute.xlu2 %2152  ;;  %s2763_s0 = sshll.u32 %s4464_s8, 2  ;;  %s2986_s26 = sshll.u32 %s4532_s16, 2  ;;  %v2191_v22 = vsel %vm1300_vm4, %v4420_v1, %v2135_v47  ;;  %vm2200_vm15 = vcmask 392192   ;;  %vm2202_vm0 = vcmask 457728   ;;  %vm2204_vm1 = vcmask 519168  }
 0x278   : > { %s4697_s9 = sadd.s32 4294967295, %s3278_s25   ;;  %v2193_v10 = vsel %vm2192_vm11, %v2191_v22, %v2144_v5  ;;  %s2534_s13 = scalar_lea.hbm %s4671_s2, %s2986_s26 }
 0x279   : > { %s4559_s27 = sand.u32 1, %s4697_s9   ;;  %s4567_s22 = scalar_lea.hbm %s4672_s3, %s2986_s26  ;;  %v2195_v31 = vsel %vm2194_vm12, %v2193_v10, %v2153_v32 }
 0x27a   : > { %s4569_s15 = scalar_lea.vmem [#allocation4], %s2763_s0  ;;  %s2565_s1 = scalar_lea.hbm %s4673_s4, %s4532_s16 }
 0x27b   : > { %s2552_s17 = sshll.u32 %s4569_s15, 4  ;;  %s254_s30 = scalar_lea.vmem [#allocation2], %s2763_s0  ;;  %s4588_s17 = int_to_ptr.vmem [resolvable:$true] %s2552_s17 }
 0x27c   : > { %s2536_s12 = sshll.u32 %s254_s30, 4  ;;  %s2538_s26 = sshll.u32 %s2534_s13, 4  ;;  %s2537_s12 = int_to_ptr.vmem [resolvable:$true] %s2536_s12  ;;  %s2539_s26 = int_to_ptr.hbm [resolvable:$true] %s2538_s26 }
 0x27d   : > { %s2554_s14 = sshll.u32 %s4567_s22, 4  ;;  %s4698_s21 = scalar_lea.vmem [#allocation6], %s4464_s8  ;;  %s4590_s14 = int_to_ptr.hbm [resolvable:$true] %s2554_s14 }
 0x27e   : > { %s4580_s5 = sshll.u32 %s4698_s21, 4  ;;  %s4582_s10 = sshll.u32 %s2565_s1, 4  ;;  %s2568_s5 = int_to_ptr.vmem [resolvable:$true] %s4580_s5  ;;  %s2570_s10 = int_to_ptr.hbm [resolvable:$true] %s4582_s10 }
 0x27f   : > { %s2509_s1 = scalar_lea.sflag [#allocation3], %s4464_s8  ;;  %s3134_s16 = sshra.s32 %s2539_s26, 4  ;;  %s3135_s16 = int_to_ptr.hbm [resolvable:$true] %s3134_s16 }
 0x280   : > { %s3136_s0 = scalar_lea.hbm %s3135_s16, 4  ;;  %s3140_s9 = scalar_lea.hbm %s4671_s2, 16 }
 0x281   : > { %p3137_p9 = scmp.ne.s32.totalorder %s3135_s16, %s3136_s0  ;;  %p3141_p12 = scmp.lt.s32.totalorder %s3135_s16, %s4671_s2 }
 0x282   : > { %p3142_p13 = scmp.lt.s32.totalorder %s3140_s9, %s3136_s0 }
 0x283   : > { %p3138_p10 = pnand %p3137_p9, %p3371_p3 }
 0x284   : > { %v2162_v13 = vpop.permute.xlu1 %2161  ;;  %p3143_p0 = por %p3142_p13, %p3141_p12 }
 0x285   : > { %v2197_v63 = vsel %vm2196_vm13, %v2195_v31, %v2162_v13  ;;  %p3139_p11 = pneg %p3138_p10 }
 0x287   : > { %p3144_p1 = pnand %p3143_p0, %p3139_p11 }
 0x28d   : > { %v2171_v23 = vpop.permute.xlu0 %2170 }
 0x28e   : > { %v2199_v9 = vsel %vm2198_vm14, %v2197_v63, %v2171_v23 }
 0x2ab   : > { %v2462_v53 = vpop.permute.xlu2 %2461 }
 0x2b1   : > { %v2444_v61 = vpop.permute.xlu0 %2443 }
 0x2b2   : > { %v2500_v49 = vsel %vm1300_vm4, %v4504_v43, %v2444_v61 }
 0x2ba   : > { %v2453_v40 = vpop.permute.xlu1 %2452 }
 0x2bb   : > { %v2501_v48 = vsel %vm2192_vm11, %v2500_v49, %v2453_v40 }
 0x2bc   : > { %v2502_v1 = vsel %vm2194_vm12, %v2501_v48, %v2462_v53 }
 0x2bd   : > { %v2480_v33 = vpop.permute.xlu2 %2479 }
 0x2c5   : > { %v2180_v29 = vpop.permute.xlu2 %2179 }
 0x2c6   : > { %v2201_v50 = vsel %vm2200_vm15, %v2199_v9, %v2180_v29 }
 0x2cc   : > { %v2471_v59 = vpop.permute.xlu0 %2470 }
 0x2cd   : > { %v2503_v11 = vsel %vm2196_vm13, %v2502_v1, %v2471_v59 }
 0x2ce   : > { %v2504_v12 = vsel %vm2198_vm14, %v2503_v11, %v2480_v33 }
 0x2de   : > { %v2489_v52 = vpop.permute.xlu1 %2488 }
 0x2df   : > { %v2505_v20 = vsel %vm2200_vm15, %v2504_v12, %v2489_v52 }
 0x2e6   : > { %v2189_v45 = vpop.permute.xlu1 %2188 }
 0x2e7   : > { %v2203_v60 = vsel %vm2202_vm0, %v2201_v50, %v2189_v45 }
 0x2e8   : > { %v2498_v38 = vpop.permute.xlu0 %2497  ;;  %2205 = vst.msk [vmem:[%s254_s30] sm:$0xf] %vm2204_vm1, %v2203_v60 }
 0x2e9   : > { %v2506_v30 = vsel %vm2202_vm0, %v2505_v20, %v2498_v38 }
 0x2ea   : > { %2507 = vst.msk [vmem:[%s4569_s15] sm:$0xf] %vm2204_vm1, %v2506_v30 }
 0x2eb   : > { %3147 = shalt.err (!%p3144_p1)
}
 0x2ec   : > { %2998 = dma.vmem_to_hbm [thread:$0]  (%p3371_p3), %s2537_s12, 64, %s2539_s26, %s2509_s1  }
 0x2ed   : > { %s2514_s8 = scalar_lea.sflag [#allocation5], %s4559_s27  ;;  %s3162_s15 = sshra.s32 %s4590_s14, 4  ;;  %s3163_s15 = int_to_ptr.hbm [resolvable:$true] %s3162_s15 }
 0x2ee   : > { %s3164_s30 = scalar_lea.hbm %s3163_s15, 4  ;;  %s3168_s0 = scalar_lea.hbm %s4672_s3, 16 }
 0x2ef   : > { %p3165_p2 = scmp.ne.s32.totalorder %s3163_s15, %s3164_s30  ;;  %p3169_p6 = scmp.lt.s32.totalorder %s3163_s15, %s4672_s3 }
 0x2f0   : > { %p3170_p7 = scmp.lt.s32.totalorder %s3168_s0, %s3164_s30 }
 0x2f1   : > { %p3166_p4 = pnand %p3165_p2, %p3371_p3 }
 0x2f2   : > { %p3171_p9 = por %p3170_p7, %p3169_p6 }
 0x2f3   : > { %p3167_p5 = pneg %p3166_p4 }
 0x2f5   : > { %p3172_p10 = pnand %p3171_p9, %p3167_p5 }
 0x2f7   : > { %3175 = shalt.err (!%p3172_p10)
}
 0x2f8   : > { %2999 = dma.vmem_to_hbm [thread:$0]  (%p3371_p3), %s4588_s17, 64, %s4590_s14, %s2514_s8  }
 0x2f9   : > { %s3190_s27 = sshra.s32 %s2570_s10, 4  ;;  %s3196_s9 = scalar_lea.hbm %s4673_s4, 4  ;;  %s3191_s27 = int_to_ptr.hbm [resolvable:$true] %s3190_s27 }
 0x2fa   : > { %s3192_s12 = scalar_lea.hbm %s3191_s27, 1  ;;  %p3197_p0 = scmp.lt.s32.totalorder %s3191_s27, %s4673_s4 }
 0x2fb   : > { %p3193_p11 = scmp.ne.s32.totalorder %s3191_s27, %s3192_s12  ;;  %p3198_p1 = scmp.lt.s32.totalorder %s3196_s9, %s3192_s12 }
 0x2fd   : > { %p3194_p12 = pnand %p3193_p11, %p3371_p3  ;;  %p3199_p2 = por %p3198_p1, %p3197_p0 }
 0x2ff   : > { %p3195_p13 = pneg %p3194_p12 }
 0x301   : > { %p3200_p4 = pnand %p3199_p2, %p3195_p13 }
 0x303   : > { %3203 = shalt.err (!%p3200_p4)
}
 0x304   : > { %3000 = dma.vmem_to_hbm [thread:$0]  (%p3371_p3), %s2568_s5, 16, %s2570_s10, %s2514_s8  }
 0x305 PF: > { %p3019_p5 = scmp.ge.s32.totalorder %s3278_s25, 2  ;;  %s2596_s17 = sand.u32 1, %s3250_s18  }
 0x306   : > { %s2597_s14 = scalar_lea.sflag [#allocation3], %s2596_s17 }
 0x307   : > { %p3007_p6 = pnand %p3019_p5, %p3382_p8 }
 0x309   : > { %p3008_p7 = pneg %p3007_p6 }
 0x30b   : > { %3237 = dma.done.wait (%p3008_p7), %s2597_s14, 64  }
 0x30c   : > { %3239 = vsyncadd (%p3008_p7), %s2597_s14, 4294967232  ;;  %s4699_s30 = sadd.s32 4294967294, %s3278_s25  }
 0x30d   : > { %s2606_s6 = sand.u32 1, %s4699_s30  }
 0x30e   : > { %s2607_s29 = scalar_lea.sflag [#allocation5], %s2606_s6 }
 0x30f   : > { %3241 = dma.done.wait (%p3008_p7), %s2607_s29, 80  }
 0x310   : > { %3243 = vsyncadd (%p3008_p7), %s2607_s29, 4294967216  ;;  %s2626_s16 = scalar_lea.sflag [#allocation8], %s2596_s17 }
 0x311   : > { %3245 = dma.done.wait (%p3008_p7), %s2626_s16, 16  }
 0x312   : > { %3247 = vsyncadd (%p3008_p7), %s2626_s16, 4294967280  ;;  %s25_s25 = sadd.s32 1, %s3278_s25   ;;  %s4700_s5 = sld [smem:[#allocation12_spill]] }
 0x313   : > { %p22_p3 = scmp.ge.s32.totalorder %s25_s25, 6   ;;  %s4701_s18 = smov %s3254_s19 }
 0x314   : > { %s4702_s19 = smov %s3258_s20  ;;  %s4703_s20 = smov %s3391_s11 }
 0x315   : > { %s4704_s21 = smov %s3270_s23  ;;  %s4705_s22 = smov %s3274_s24 }
 0x316   : > { %s4706_s23 = smov %s4709_s28  ;;  %24 = sbr.rel (!%p22_p3) target bundleno = 13 (0xd), region = 128 }
 0x318   : > { %s4707_s24 = smov %s4700_s5 }
 0x31b   :  { %2631 = vsyncpa [#allocation3], 1 }
 0x31c   :  { %2633 = vsyncpa [#allocation3 + $0x1], 1 }
 0x31d   :  { %2634 = vsyncpa [#allocation5], 1 }
 0x31e   :  { %2636 = vsyncpa [#allocation5 + $0x1], 1 }
 0x31f   :  { %2637 = vsyncpa [#allocation8], 1 }
 0x320   :  { %2639 = vsyncpa [#allocation8 + $0x1], 1 }

</bundles_post_ra>
